<compile_context>
chip_gen: v5e
topology: v5e:2x2
jax: 0.10.0
libtpu: 0.0.40
codegen_flags: <defaults>
</compile_context>

<pallas_src>
import functools

import jax
import jax.numpy as jnp
import numpy as np
from jax.experimental import pallas as pl
from jax.experimental.pallas import tpu as pltpu

KSIZE = 7
PAD = 3  # padding = 3 for kernel_size 7 (same as the PyTorch module)


def _round_up(x, m):
    return ((x + m - 1) // m) * m


def _largest_divisor_at_most(n, cap):
    cap = max(1, min(n, cap))
    for d in range(cap, 0, -1):
        if n % d == 0:
            return d
    return 1


def _pick_channel_chunk(c, nb, hw, elem_bytes, budget_bytes):
    """Largest legal channel chunk (divides C, multiple of 8 or == C) in budget."""
    max_ck = max(1, budget_bytes // (nb * hw * elem_bytes))
    if c <= max_ck:
        return c
    best = None
    ck = 8
    while ck <= max_ck:
        if c % ck == 0:
            best = ck
        ck += 8
    if best is not None:
        return best
    for ck in range(8, c, 8):
        if c % ck == 0:
            return ck
    # TODO(synk): C has no multiple-of-8 divisor to chunk with; fall back to full C.
    return c


def _spatial_attention_kernel(w_ref, col_ref, x_ref, o_ref, sum_ref, max_ref,
                              *, width, border):
    # w_ref:   SMEM (2*7*7,) f32 conv weights; first 49 pre-scaled by 1/C (avg plane).
    # col_ref: VMEM (1, H*W) int32 column index of every flattened pixel.
    # x_ref:   VMEM (Nb, Ck, H*W) channel chunk of Nb images (lane-dense).
    # o_ref:   VMEM (Nb, 1, H*W) output attention map.
    # sum_ref / max_ref: VMEM (Nb, border + H*W + border) running accumulators
    #     whose vertical-padding borders are zeroed only at the conv stage.
    k = pl.program_id(1)
    nk = pl.num_programs(1)
    nb, _, hw = x_ref.shape
    b0 = border

    # Lane-dense channel reduction for this chunk.
    x = x_ref[...].astype(jnp.float32)
    psum = jnp.sum(x, axis=1)           # (Nb, HW)
    pmax = jnp.max(x, axis=1)           # (Nb, HW)

    @pl.when(k == 0)
    def _init():
        sum_ref[:, b0:b0 + hw] = psum
        max_ref[:, b0:b0 + hw] = pmax

    @pl.when(k > 0)
    def _accumulate():
        sum_ref[:, b0:b0 + hw] = sum_ref[:, b0:b0 + hw] + psum
        max_ref[:, b0:b0 + hw] = jnp.maximum(max_ref[:, b0:b0 + hw], pmax)

    @pl.when(k == nk - 1)
    def _conv_and_sigmoid():
        # Zero only the small vertical-padding borders; the interior is always
        # fully overwritten by the reduction above (no full-scratch re-zero).
        zb = jnp.zeros((nb, b0), jnp.float32)
        sum_ref[:, 0:b0] = zb
        sum_ref[:, b0 + hw:b0 + hw + b0] = zb
        max_ref[:, 0:b0] = zb
        max_ref[:, b0 + hw:b0 + hw + b0] = zb

        col = col_ref[...]              # (1, HW) int32

        acc_a = jnp.zeros((nb, hw), jnp.float32)
        acc_b = jnp.zeros((nb, hw), jnp.float32)
        for kx in range(KSIZE):
            dx = kx - PAD
            # Four independent FMA chains: {avg, max} x {even ky, odd ky}.
            p00 = jnp.zeros((nb, hw), jnp.float32)
            p01 = jnp.zeros((nb, hw), jnp.float32)
            p10 = jnp.zeros((nb, hw), jnp.float32)
            p11 = jnp.zeros((nb, hw), jnp.float32)
            for ky in range(KSIZE):
                dy = ky - PAD
                off = b0 + dy * width + dx
                w_avg = w_ref[ky * KSIZE + kx]                    # pre-scaled by 1/C
                w_max = w_ref[KSIZE * KSIZE + ky * KSIZE + kx]
                t_avg = w_avg * sum_ref[:, off:off + hw]
                t_max = w_max * max_ref[:, off:off + hw]
                if ky % 2 == 0:
                    p00 = p00 + t_avg
                    p10 = p10 + t_max
                else:
                    p01 = p01 + t_avg
                    p11 = p11 + t_max
            col_sum = (p00 + p01) + (p10 + p11)
            shifted_col = col + dx
            in_row = (shifted_col >= 0) & (shifted_col < width)
            masked = jnp.where(in_row, col_sum, 0.0)
            if kx % 2 == 0:
                acc_a = acc_a + masked
            else:
                acc_b = acc_b + masked

        o_ref[:, 0, :] = jax.nn.sigmoid(acc_a + acc_b).astype(o_ref.dtype)


def spatial_attention(x, weight):
    """x: (N, C, H, W); weight: (1, 2, 7, 7) -> (N, 1, H, W) attention map."""
    n, c, h, w = x.shape
    assert weight.shape == (1, 2, KSIZE, KSIZE)
    hw = h * w
    elem_bytes = jnp.dtype(x.dtype).itemsize

    # Lane-dense view of x (contiguous reshape -> free in XLA).
    x_flat = x.reshape(n, c, hw)

    # Fold the 1/C of the channel mean into the avg-plane conv weights (49 floats).
    w2 = weight.astype(jnp.float32).reshape(2, KSIZE * KSIZE)
    w_flat = jnp.concatenate([w2[0] / float(c), w2[1]], axis=0)   # (98,)

    # Column index of each flattened pixel (drives the horizontal conv mask).
    col_idx = jnp.broadcast_to(jnp.arange(w, dtype=jnp.int32), (h, w)).reshape(1, hw)

    # Tile selection: several images per grid step (amortize step overhead) and a
    # channel chunk that keeps the double-buffered x block comfortably in VMEM,
    # conservative enough for v7x's 64 MiB physical VMEM.
    nb_cap = max(1, (2 * 1024 * 1024) // (hw * elem_bytes))
    nb = _largest_divisor_at_most(n, min(8, nb_cap))
    ck = _pick_channel_chunk(c, nb, hw, elem_bytes, budget_bytes=4 * 1024 * 1024)

    border = _round_up(PAD * w + PAD, 128)     # zeroed vertical border (lanes)
    grid = (n // nb, c // ck)

    kernel = functools.partial(_spatial_attention_kernel, width=w, border=border)

    out_flat = pl.pallas_call(
        kernel,
        out_shape=jax.ShapeDtypeStruct((n, 1, hw), x.dtype),
        grid_spec=pltpu.PrefetchScalarGridSpec(
            num_scalar_prefetch=0,
            grid=grid,
            in_specs=[
                # conv weights: tiny scalar table -> SMEM, untiled
                pl.BlockSpec(memory_space=pltpu.MemorySpace.SMEM),
                # per-pixel column index (same block every step -> fetched once)
                pl.BlockSpec((1, hw), lambda b, k: (0, 0)),
                # lane-dense channel chunk of Nb images
                pl.BlockSpec((nb, ck, hw), lambda b, k: (b, k, 0)),
            ],
            out_specs=pl.BlockSpec((nb, 1, hw), lambda b, k: (b, 0, 0)),
            scratch_shapes=[
                pltpu.VMEM((nb, border + hw + border), jnp.float32),   # running sum
                pltpu.VMEM((nb, border + hw + border), jnp.float32),   # running max
            ],
        ),
        compiler_params=pltpu.CompilerParams(
            dimension_semantics=("parallel", "arbitrary"),
            vmem_limit_bytes=32 * 1024 * 1024,
        ),
    )(w_flat, col_idx, x_flat)

    return out_flat.reshape(n, 1, h, w)


def spatial_attention_reference(x, weight):
    """Pure-JAX reference matching the PyTorch forward exactly."""
    avg = jnp.mean(x, axis=1, keepdims=True)
    mx = jnp.max(x, axis=1, keepdims=True)
    cat = jnp.concatenate([avg, mx], axis=1)
    out = jax.lax.conv_general_dilated(
        cat, weight, window_strides=(1, 1),
        padding=((PAD, PAD), (PAD, PAD)),
        dimension_numbers=("NCHW", "OIHW", "NCHW"),
    )
    return jax.nn.sigmoid(out)


if __name__ == "__main__":
    key = jax.random.PRNGKey(0)
    kx_key, kw_key = jax.random.split(key)

    N, C, H, W = 2, 4, 16, 16
    x = jax.random.normal(kx_key, (N, C, H, W), dtype=jnp.float32)
    # Deterministic synthetic conv weight (nn.Conv2d(2, 1, 7, bias=False)-shaped).
    weight = 0.1 * jax.random.normal(kw_key, (1, 2, KSIZE, KSIZE), dtype=jnp.float32)

    out = jax.block_until_ready(spatial_attention(x, weight))
    ref = jax.block_until_ready(spatial_attention_reference(x, weight))

    assert out.shape == (N, 1, H, W), out.shape
    np.testing.assert_allclose(np.asarray(out), np.asarray(ref), rtol=1e-5, atol=1e-5)
    print("KERNEL_OK")
</pallas_src>

<mosaic_0001>
module attributes {stable_mosaic.version = 11 : i64} {
  func.func @_spatial_attention_kernel(%arg0: i32, %arg1: i32, %arg2: memref<98xf32, #tpu.memory_space<smem>>, %arg3: memref<1x256xi32, #tpu.memory_space<vmem>>, %arg4: memref<2x4x256xf32, #tpu.memory_space<vmem>>, %arg5: memref<2x1x256xf32, #tpu.memory_space<vmem>>, %arg6: memref<2x512xf32, #tpu.memory_space<vmem>>, %arg7: memref<2x512xf32, #tpu.memory_space<vmem>>) attributes {dimension_semantics = [#tpu.dimension_semantics<parallel>, #tpu.dimension_semantics<arbitrary>], iteration_bounds = array<i64: 1, 1>, scalar_prefetch = 0 : i64, scratch_operands = 2 : i64, tpu.core_type = #tpu.core_type<tc>, window_params = [{transform_indices = @transform_0, window_bounds = array<i64: 98>}, {pipeline_mode = #tpu.pipeline_mode<synchronous>, transform_indices = @transform_1, window_bounds = array<i64: 1, 256>}, {transform_indices = @transform_2, window_bounds = array<i64: 2, 4, 256>}, {transform_indices = @transform_3, window_bounds = array<i64: 2, 1, 256>}]} {
    %c0 = arith.constant 0 : index
    %c0_0 = arith.constant 0 : index
    %c0_1 = arith.constant 0 : index
    %0 = vector.load %arg4[%c0, %c0_0, %c0_1] : memref<2x4x256xf32, #tpu.memory_space<vmem>>, vector<2x4x256xf32>
    %cst = arith.constant dense<0.000000e+00> : vector<2x256xf32>
    %1 = vector.multi_reduction <add>, %0, %cst [1] : vector<2x4x256xf32> to vector<2x256xf32>
    %cst_2 = arith.constant dense<0xFF800000> : vector<2x256xf32>
    %2 = vector.multi_reduction <maximumf>, %0, %cst_2 [1] : vector<2x4x256xf32> to vector<2x256xf32>
    %c0_i32 = arith.constant 0 : i32
    %3 = arith.cmpi eq, %arg1, %c0_i32 : i32
    %4 = arith.extui %3 : i1 to i32
    %c0_i32_3 = arith.constant 0 : i32
    %5 = arith.cmpi ne, %4, %c0_i32_3 : i32
    scf.if %5 {
      %c0_8 = arith.constant 0 : index
      %c128 = arith.constant 128 : index
      %12 = vector.load %arg6[%c0_8, %c128] : memref<2x512xf32, #tpu.memory_space<vmem>>, vector<2x256xf32>
      tpu.vector_store %arg6[%c0_8, %c128], %1 {strides = array<i32>} : memref<2x512xf32, #tpu.memory_space<vmem>>, vector<2x256xf32>,
      %c0_9 = arith.constant 0 : index
      %c128_10 = arith.constant 128 : index
      %13 = vector.load %arg7[%c0_9, %c128_10] : memref<2x512xf32, #tpu.memory_space<vmem>>, vector<2x256xf32>
      tpu.vector_store %arg7[%c0_9, %c128_10], %2 {strides = array<i32>} : memref<2x512xf32, #tpu.memory_space<vmem>>, vector<2x256xf32>,
    } else {
    }
    %c0_i32_4 = arith.constant 0 : i32
    %6 = arith.cmpi sgt, %arg1, %c0_i32_4 : i32
    %7 = arith.extui %6 : i1 to i32
    %c0_i32_5 = arith.constant 0 : i32
    %8 = arith.cmpi ne, %7, %c0_i32_5 : i32
    scf.if %8 {
      %c0_8 = arith.constant 0 : index
      %c128 = arith.constant 128 : index
      %12 = vector.load %arg6[%c0_8, %c128] : memref<2x512xf32, #tpu.memory_space<vmem>>, vector<2x256xf32>
      %13 = arith.addf %12, %1 : vector<2x256xf32>
      %c0_9 = arith.constant 0 : index
      %c128_10 = arith.constant 128 : index
      %14 = vector.load %arg6[%c0_9, %c128_10] : memref<2x512xf32, #tpu.memory_space<vmem>>, vector<2x256xf32>
      tpu.vector_store %arg6[%c0_9, %c128_10], %13 {strides = array<i32>} : memref<2x512xf32, #tpu.memory_space<vmem>>, vector<2x256xf32>,
      %c0_11 = arith.constant 0 : index
      %c128_12 = arith.constant 128 : index
      %15 = vector.load %arg7[%c0_11, %c128_12] : memref<2x512xf32, #tpu.memory_space<vmem>>, vector<2x256xf32>
      %16 = arith.maximumf %15, %2 : vector<2x256xf32>
      %c0_13 = arith.constant 0 : index
      %c128_14 = arith.constant 128 : index
      %17 = vector.load %arg7[%c0_13, %c128_14] : memref<2x512xf32, #tpu.memory_space<vmem>>, vector<2x256xf32>
      tpu.vector_store %arg7[%c0_13, %c128_14], %16 {strides = array<i32>} : memref<2x512xf32, #tpu.memory_space<vmem>>, vector<2x256xf32>,
    } else {
    }
    %c0_i32_6 = arith.constant 0 : i32
    %9 = arith.cmpi eq, %arg1, %c0_i32_6 : i32
    %10 = arith.extui %9 : i1 to i32
    %c0_i32_7 = arith.constant 0 : i32
    %11 = arith.cmpi ne, %10, %c0_i32_7 : i32
    scf.if %11 {
      %cst_8 = arith.constant 0.000000e+00 : f32
      %12 = vector.broadcast %cst_8 : f32 to vector<2x128xf32>
      %c0_9 = arith.constant 0 : index
      %c0_10 = arith.constant 0 : index
      %13 = vector.load %arg6[%c0_9, %c0_10] : memref<2x512xf32, #tpu.memory_space<vmem>>, vector<2x128xf32>
      tpu.vector_store %arg6[%c0_9, %c0_10], %12 {strides = array<i32>} : memref<2x512xf32, #tpu.memory_space<vmem>>, vector<2x128xf32>,
      %c0_11 = arith.constant 0 : index
      %c384 = arith.constant 384 : index
      %14 = vector.load %arg6[%c0_11, %c384] : memref<2x512xf32, #tpu.memory_space<vmem>>, vector<2x128xf32>
      tpu.vector_store %arg6[%c0_11, %c384], %12 {strides = array<i32>} : memref<2x512xf32, #tpu.memory_space<vmem>>, vector<2x128xf32>,
      %c0_12 = arith.constant 0 : index
      %c0_13 = arith.constant 0 : index
      %15 = vector.load %arg7[%c0_12, %c0_13] : memref<2x512xf32, #tpu.memory_space<vmem>>, vector<2x128xf32>
      tpu.vector_store %arg7[%c0_12, %c0_13], %12 {strides = array<i32>} : memref<2x512xf32, #tpu.memory_space<vmem>>, vector<2x128xf32>,
      %c0_14 = arith.constant 0 : index
      %c384_15 = arith.constant 384 : index
      %16 = vector.load %arg7[%c0_14, %c384_15] : memref<2x512xf32, #tpu.memory_space<vmem>>, vector<2x128xf32>
      tpu.vector_store %arg7[%c0_14, %c384_15], %12 {strides = array<i32>} : memref<2x512xf32, #tpu.memory_space<vmem>>, vector<2x128xf32>,
      %c0_16 = arith.constant 0 : index
      %c0_17 = arith.constant 0 : index
      %17 = vector.load %arg3[%c0_16, %c0_17] : memref<1x256xi32, #tpu.memory_space<vmem>>, vector<1x256xi32>
      %cst_18 = arith.constant 0.000000e+00 : f32
      %18 = vector.broadcast %cst_18 : f32 to vector<2x256xf32>
      %cst_19 = arith.constant 0.000000e+00 : f32
      %19 = vector.broadcast %cst_19 : f32 to vector<2x256xf32>
      %cst_20 = arith.constant 0.000000e+00 : f32
      %20 = vector.broadcast %cst_20 : f32 to vector<2x256xf32>
      %cst_21 = arith.constant 0.000000e+00 : f32
      %21 = vector.broadcast %cst_21 : f32 to vector<2x256xf32>
      %cst_22 = arith.constant 0.000000e+00 : f32
      %22 = vector.broadcast %cst_22 : f32 to vector<2x256xf32>
      %cst_23 = arith.constant 0.000000e+00 : f32
      %23 = vector.broadcast %cst_23 : f32 to vector<2x256xf32>
      %c0_24 = arith.constant 0 : index
      %24 = memref.load %arg2[%c0_24] : memref<98xf32, #tpu.memory_space<smem>>
      %c49 = arith.constant 49 : index
      %25 = memref.load %arg2[%c49] : memref<98xf32, #tpu.memory_space<smem>>
      %c0_25 = arith.constant 0 : index
      %c77 = arith.constant 77 : index
      %26 = vector.load %arg6[%c0_25, %c77] : memref<2x512xf32, #tpu.memory_space<vmem>>, vector<2x256xf32>
      %27 = vector.broadcast %24 : f32 to vector<2x256xf32>
      %28 = arith.mulf %27, %26 : vector<2x256xf32>
      %c0_26 = arith.constant 0 : index
      %c77_27 = arith.constant 77 : index
      %29 = vector.load %arg7[%c0_26, %c77_27] : memref<2x512xf32, #tpu.memory_space<vmem>>, vector<2x256xf32>
      %30 = vector.broadcast %25 : f32 to vector<2x256xf32>
      %31 = arith.mulf %30, %29 : vector<2x256xf32>
      %32 = arith.addf %20, %28 : vector<2x256xf32>
      %33 = arith.addf %22, %31 : vector<2x256xf32>
      %c7 = arith.constant 7 : index
      %34 = memref.load %arg2[%c7] : memref<98xf32, #tpu.memory_space<smem>>
      %c56 = arith.constant 56 : index
      %35 = memref.load %arg2[%c56] : memref<98xf32, #tpu.memory_space<smem>>
      %c0_28 = arith.constant 0 : index
      %c93 = arith.constant 93 : index
      %36 = vector.load %arg6[%c0_28, %c93] : memref<2x512xf32, #tpu.memory_space<vmem>>, vector<2x256xf32>
      %37 = vector.broadcast %34 : f32 to vector<2x256xf32>
      %38 = arith.mulf %37, %36 : vector<2x256xf32>
      %c0_29 = arith.constant 0 : index
      %c93_30 = arith.constant 93 : index
      %39 = vector.load %arg7[%c0_29, %c93_30] : memref<2x512xf32, #tpu.memory_space<vmem>>, vector<2x256xf32>
      %40 = vector.broadcast %35 : f32 to vector<2x256xf32>
      %41 = arith.mulf %40, %39 : vector<2x256xf32>
      %42 = arith.addf %21, %38 : vector<2x256xf32>
      %43 = arith.addf %23, %41 : vector<2x256xf32>
      %c14 = arith.constant 14 : index
      %44 = memref.load %arg2[%c14] : memref<98xf32, #tpu.memory_space<smem>>
      %c63 = arith.constant 63 : index
      %45 = memref.load %arg2[%c63] : memref<98xf32, #tpu.memory_space<smem>>
      %c0_31 = arith.constant 0 : index
      %c109 = arith.constant 109 : index
      %46 = vector.load %arg6[%c0_31, %c109] : memref<2x512xf32, #tpu.memory_space<vmem>>, vector<2x256xf32>
      %47 = vector.broadcast %44 : f32 to vector<2x256xf32>
      %48 = arith.mulf %47, %46 : vector<2x256xf32>
      %c0_32 = arith.constant 0 : index
      %c109_33 = arith.constant 109 : index
      %49 = vector.load %arg7[%c0_32, %c109_33] : memref<2x512xf32, #tpu.memory_space<vmem>>, vector<2x256xf32>
      %50 = vector.broadcast %45 : f32 to vector<2x256xf32>
      %51 = arith.mulf %50, %49 : vector<2x256xf32>
      %52 = arith.addf %32, %48 : vector<2x256xf32>
      %53 = arith.addf %33, %51 : vector<2x256xf32>
      %c21 = arith.constant 21 : index
      %54 = memref.load %arg2[%c21] : memref<98xf32, #tpu.memory_space<smem>>
      %c70 = arith.constant 70 : index
      %55 = memref.load %arg2[%c70] : memref<98xf32, #tpu.memory_space<smem>>
      %c0_34 = arith.constant 0 : index
      %c125 = arith.constant 125 : index
      %56 = vector.load %arg6[%c0_34, %c125] : memref<2x512xf32, #tpu.memory_space<vmem>>, vector<2x256xf32>
      %57 = vector.broadcast %54 : f32 to vector<2x256xf32>
      %58 = arith.mulf %57, %56 : vector<2x256xf32>
      %c0_35 = arith.constant 0 : index
      %c125_36 = arith.constant 125 : index
      %59 = vector.load %arg7[%c0_35, %c125_36] : memref<2x512xf32, #tpu.memory_space<vmem>>, vector<2x256xf32>
      %60 = vector.broadcast %55 : f32 to vector<2x256xf32>
      %61 = arith.mulf %60, %59 : vector<2x256xf32>
      %62 = arith.addf %42, %58 : vector<2x256xf32>
      %63 = arith.addf %43, %61 : vector<2x256xf32>
      %c28 = arith.constant 28 : index
      %64 = memref.load %arg2[%c28] : memref<98xf32, #tpu.memory_space<smem>>
      %c77_37 = arith.constant 77 : index
      %65 = memref.load %arg2[%c77_37] : memref<98xf32, #tpu.memory_space<smem>>
      %c0_38 = arith.constant 0 : index
      %c141 = arith.constant 141 : index
      %66 = vector.load %arg6[%c0_38, %c141] : memref<2x512xf32, #tpu.memory_space<vmem>>, vector<2x256xf32>
      %67 = vector.broadcast %64 : f32 to vector<2x256xf32>
      %68 = arith.mulf %67, %66 : vector<2x256xf32>
      %c0_39 = arith.constant 0 : index
      %c141_40 = arith.constant 141 : index
      %69 = vector.load %arg7[%c0_39, %c141_40] : memref<2x512xf32, #tpu.memory_space<vmem>>, vector<2x256xf32>
      %70 = vector.broadcast %65 : f32 to vector<2x256xf32>
      %71 = arith.mulf %70, %69 : vector<2x256xf32>
      %72 = arith.addf %52, %68 : vector<2x256xf32>
      %73 = arith.addf %53, %71 : vector<2x256xf32>
      %c35 = arith.constant 35 : index
      %74 = memref.load %arg2[%c35] : memref<98xf32, #tpu.memory_space<smem>>
      %c84 = arith.constant 84 : index
      %75 = memref.load %arg2[%c84] : memref<98xf32, #tpu.memory_space<smem>>
      %c0_41 = arith.constant 0 : index
      %c157 = arith.constant 157 : index
      %76 = vector.load %arg6[%c0_41, %c157] : memref<2x512xf32, #tpu.memory_space<vmem>>, vector<2x256xf32>
      %77 = vector.broadcast %74 : f32 to vector<2x256xf32>
      %78 = arith.mulf %77, %76 : vector<2x256xf32>
      %c0_42 = arith.constant 0 : index
      %c157_43 = arith.constant 157 : index
      %79 = vector.load %arg7[%c0_42, %c157_43] : memref<2x512xf32, #tpu.memory_space<vmem>>, vector<2x256xf32>
      %80 = vector.broadcast %75 : f32 to vector<2x256xf32>
      %81 = arith.mulf %80, %79 : vector<2x256xf32>
      %82 = arith.addf %62, %78 : vector<2x256xf32>
      %83 = arith.addf %63, %81 : vector<2x256xf32>
      %c42 = arith.constant 42 : index
      %84 = memref.load %arg2[%c42] : memref<98xf32, #tpu.memory_space<smem>>
      %c91 = arith.constant 91 : index
      %85 = memref.load %arg2[%c91] : memref<98xf32, #tpu.memory_space<smem>>
      %c0_44 = arith.constant 0 : index
      %c173 = arith.constant 173 : index
      %86 = vector.load %arg6[%c0_44, %c173] : memref<2x512xf32, #tpu.memory_space<vmem>>, vector<2x256xf32>
      %87 = vector.broadcast %84 : f32 to vector<2x256xf32>
      %88 = arith.mulf %87, %86 : vector<2x256xf32>
      %c0_45 = arith.constant 0 : index
      %c173_46 = arith.constant 173 : index
      %89 = vector.load %arg7[%c0_45, %c173_46] : memref<2x512xf32, #tpu.memory_space<vmem>>, vector<2x256xf32>
      %90 = vector.broadcast %85 : f32 to vector<2x256xf32>
      %91 = arith.mulf %90, %89 : vector<2x256xf32>
      %92 = arith.addf %72, %88 : vector<2x256xf32>
      %93 = arith.addf %73, %91 : vector<2x256xf32>
      %94 = arith.addf %92, %82 : vector<2x256xf32>
      %95 = arith.addf %93, %83 : vector<2x256xf32>
      %96 = arith.addf %94, %95 : vector<2x256xf32>
      %c-3_i32 = arith.constant -3 : i32
      %97 = vector.broadcast %c-3_i32 : i32 to vector<1x256xi32>
      %98 = arith.addi %17, %97 : vector<1x256xi32>
      %c0_i32_47 = arith.constant 0 : i32
      %99 = vector.broadcast %c0_i32_47 : i32 to vector<1x256xi32>
      %100 = arith.cmpi sge, %98, %99 : vector<1x256xi32>
      %c16_i32 = arith.constant 16 : i32
      %101 = vector.broadcast %c16_i32 : i32 to vector<1x256xi32>
      %102 = arith.cmpi slt, %98, %101 : vector<1x256xi32>
      %103 = arith.andi %100, %102 : vector<1x256xi1>
      %cst_48 = arith.constant 0.000000e+00 : f32
      %104 = vector.shape_cast %103 : vector<1x256xi1> to vector<1x256xi1>
      %105 = vector.broadcast %104 : vector<1x256xi1> to vector<2x256xi1>
      %106 = vector.broadcast %cst_48 : f32 to vector<2x256xf32>
      %107 = arith.select %105, %96, %106 : vector<2x256xi1>, vector<2x256xf32>
      %108 = arith.addf %18, %107 : vector<2x256xf32>
      %cst_49 = arith.constant 0.000000e+00 : f32
      %109 = vector.broadcast %cst_49 : f32 to vector<2x256xf32>
      %cst_50 = arith.constant 0.000000e+00 : f32
      %110 = vector.broadcast %cst_50 : f32 to vector<2x256xf32>
      %cst_51 = arith.constant 0.000000e+00 : f32
      %111 = vector.broadcast %cst_51 : f32 to vector<2x256xf32>
      %cst_52 = arith.constant 0.000000e+00 : f32
      %112 = vector.broadcast %cst_52 : f32 to vector<2x256xf32>
      %c1 = arith.constant 1 : index
      %113 = memref.load %arg2[%c1] : memref<98xf32, #tpu.memory_space<smem>>
      %c50 = arith.constant 50 : index
      %114 = memref.load %arg2[%c50] : memref<98xf32, #tpu.memory_space<smem>>
      %c0_53 = arith.constant 0 : index
      %c78 = arith.constant 78 : index
      %115 = vector.load %arg6[%c0_53, %c78] : memref<2x512xf32, #tpu.memory_space<vmem>>, vector<2x256xf32>
      %116 = vector.broadcast %113 : f32 to vector<2x256xf32>
      %117 = arith.mulf %116, %115 : vector<2x256xf32>
      %c0_54 = arith.constant 0 : index
      %c78_55 = arith.constant 78 : index
      %118 = vector.load %arg7[%c0_54, %c78_55] : memref<2x512xf32, #tpu.memory_space<vmem>>, vector<2x256xf32>
      %119 = vector.broadcast %114 : f32 to vector<2x256xf32>
      %120 = arith.mulf %119, %118 : vector<2x256xf32>
      %121 = arith.addf %109, %117 : vector<2x256xf32>
      %122 = arith.addf %111, %120 : vector<2x256xf32>
      %c8 = arith.constant 8 : index
      %123 = memref.load %arg2[%c8] : memref<98xf32, #tpu.memory_space<smem>>
      %c57 = arith.constant 57 : index
      %124 = memref.load %arg2[%c57] : memref<98xf32, #tpu.memory_space<smem>>
      %c0_56 = arith.constant 0 : index
      %c94 = arith.constant 94 : index
      %125 = vector.load %arg6[%c0_56, %c94] : memref<2x512xf32, #tpu.memory_space<vmem>>, vector<2x256xf32>
      %126 = vector.broadcast %123 : f32 to vector<2x256xf32>
      %127 = arith.mulf %126, %125 : vector<2x256xf32>
      %c0_57 = arith.constant 0 : index
      %c94_58 = arith.constant 94 : index
      %128 = vector.load %arg7[%c0_57, %c94_58] : memref<2x512xf32, #tpu.memory_space<vmem>>, vector<2x256xf32>
      %129 = vector.broadcast %124 : f32 to vector<2x256xf32>
      %130 = arith.mulf %129, %128 : vector<2x256xf32>
      %131 = arith.addf %110, %127 : vector<2x256xf32>
      %132 = arith.addf %112, %130 : vector<2x256xf32>
      %c15 = arith.constant 15 : index
      %133 = memref.load %arg2[%c15] : memref<98xf32, #tpu.memory_space<smem>>
      %c64 = arith.constant 64 : index
      %134 = memref.load %arg2[%c64] : memref<98xf32, #tpu.memory_space<smem>>
      %c0_59 = arith.constant 0 : index
      %c110 = arith.constant 110 : index
      %135 = vector.load %arg6[%c0_59, %c110] : memref<2x512xf32, #tpu.memory_space<vmem>>, vector<2x256xf32>
      %136 = vector.broadcast %133 : f32 to vector<2x256xf32>
      %137 = arith.mulf %136, %135 : vector<2x256xf32>
      %c0_60 = arith.constant 0 : index
      %c110_61 = arith.constant 110 : index
      %138 = vector.load %arg7[%c0_60, %c110_61] : memref<2x512xf32, #tpu.memory_space<vmem>>, vector<2x256xf32>
      %139 = vector.broadcast %134 : f32 to vector<2x256xf32>
      %140 = arith.mulf %139, %138 : vector<2x256xf32>
      %141 = arith.addf %121, %137 : vector<2x256xf32>
      %142 = arith.addf %122, %140 : vector<2x256xf32>
      %c22 = arith.constant 22 : index
      %143 = memref.load %arg2[%c22] : memref<98xf32, #tpu.memory_space<smem>>
      %c71 = arith.constant 71 : index
      %144 = memref.load %arg2[%c71] : memref<98xf32, #tpu.memory_space<smem>>
      %c0_62 = arith.constant 0 : index
      %c126 = arith.constant 126 : index
      %145 = vector.load %arg6[%c0_62, %c126] : memref<2x512xf32, #tpu.memory_space<vmem>>, vector<2x256xf32>
      %146 = vector.broadcast %143 : f32 to vector<2x256xf32>
      %147 = arith.mulf %146, %145 : vector<2x256xf32>
      %c0_63 = arith.constant 0 : index
      %c126_64 = arith.constant 126 : index
      %148 = vector.load %arg7[%c0_63, %c126_64] : memref<2x512xf32, #tpu.memory_space<vmem>>, vector<2x256xf32>
      %149 = vector.broadcast %144 : f32 to vector<2x256xf32>
      %150 = arith.mulf %149, %148 : vector<2x256xf32>
      %151 = arith.addf %131, %147 : vector<2x256xf32>
      %152 = arith.addf %132, %150 : vector<2x256xf32>
      %c29 = arith.constant 29 : index
      %153 = memref.load %arg2[%c29] : memref<98xf32, #tpu.memory_space<smem>>
      %c78_65 = arith.constant 78 : index
      %154 = memref.load %arg2[%c78_65] : memref<98xf32, #tpu.memory_space<smem>>
      %c0_66 = arith.constant 0 : index
      %c142 = arith.constant 142 : index
      %155 = vector.load %arg6[%c0_66, %c142] : memref<2x512xf32, #tpu.memory_space<vmem>>, vector<2x256xf32>
      %156 = vector.broadcast %153 : f32 to vector<2x256xf32>
      %157 = arith.mulf %156, %155 : vector<2x256xf32>
      %c0_67 = arith.constant 0 : index
      %c142_68 = arith.constant 142 : index
      %158 = vector.load %arg7[%c0_67, %c142_68] : memref<2x512xf32, #tpu.memory_space<vmem>>, vector<2x256xf32>
      %159 = vector.broadcast %154 : f32 to vector<2x256xf32>
      %160 = arith.mulf %159, %158 : vector<2x256xf32>
      %161 = arith.addf %141, %157 : vector<2x256xf32>
      %162 = arith.addf %142, %160 : vector<2x256xf32>
      %c36 = arith.constant 36 : index
      %163 = memref.load %arg2[%c36] : memref<98xf32, #tpu.memory_space<smem>>
      %c85 = arith.constant 85 : index
      %164 = memref.load %arg2[%c85] : memref<98xf32, #tpu.memory_space<smem>>
      %c0_69 = arith.constant 0 : index
      %c158 = arith.constant 158 : index
      %165 = vector.load %arg6[%c0_69, %c158] : memref<2x512xf32, #tpu.memory_space<vmem>>, vector<2x256xf32>
      %166 = vector.broadcast %163 : f32 to vector<2x256xf32>
      %167 = arith.mulf %166, %165 : vector<2x256xf32>
      %c0_70 = arith.constant 0 : index
      %c158_71 = arith.constant 158 : index
      %168 = vector.load %arg7[%c0_70, %c158_71] : memref<2x512xf32, #tpu.memory_space<vmem>>, vector<2x256xf32>
      %169 = vector.broadcast %164 : f32 to vector<2x256xf32>
      %170 = arith.mulf %169, %168 : vector<2x256xf32>
      %171 = arith.addf %151, %167 : vector<2x256xf32>
      %172 = arith.addf %152, %170 : vector<2x256xf32>
      %c43 = arith.constant 43 : index
      %173 = memref.load %arg2[%c43] : memref<98xf32, #tpu.memory_space<smem>>
      %c92 = arith.constant 92 : index
      %174 = memref.load %arg2[%c92] : memref<98xf32, #tpu.memory_space<smem>>
      %c0_72 = arith.constant 0 : index
      %c174 = arith.constant 174 : index
      %175 = vector.load %arg6[%c0_72, %c174] : memref<2x512xf32, #tpu.memory_space<vmem>>, vector<2x256xf32>
      %176 = vector.broadcast %173 : f32 to vector<2x256xf32>
      %177 = arith.mulf %176, %175 : vector<2x256xf32>
      %c0_73 = arith.constant 0 : index
      %c174_74 = arith.constant 174 : index
      %178 = vector.load %arg7[%c0_73, %c174_74] : memref<2x512xf32, #tpu.memory_space<vmem>>, vector<2x256xf32>
      %179 = vector.broadcast %174 : f32 to vector<2x256xf32>
      %180 = arith.mulf %179, %178 : vector<2x256xf32>
      %181 = arith.addf %161, %177 : vector<2x256xf32>
      %182 = arith.addf %162, %180 : vector<2x256xf32>
      %183 = arith.addf %181, %171 : vector<2x256xf32>
      %184 = arith.addf %182, %172 : vector<2x256xf32>
      %185 = arith.addf %183, %184 : vector<2x256xf32>
      %c-2_i32 = arith.constant -2 : i32
      %186 = vector.broadcast %c-2_i32 : i32 to vector<1x256xi32>
      %187 = arith.addi %17, %186 : vector<1x256xi32>
      %c0_i32_75 = arith.constant 0 : i32
      %188 = vector.broadcast %c0_i32_75 : i32 to vector<1x256xi32>
      %189 = arith.cmpi sge, %187, %188 : vector<1x256xi32>
      %c16_i32_76 = arith.constant 16 : i32
      %190 = vector.broadcast %c16_i32_76 : i32 to vector<1x256xi32>
      %191 = arith.cmpi slt, %187, %190 : vector<1x256xi32>
      %192 = arith.andi %189, %191 : vector<1x256xi1>
      %cst_77 = arith.constant 0.000000e+00 : f32
      %193 = vector.shape_cast %192 : vector<1x256xi1> to vector<1x256xi1>
      %194 = vector.broadcast %193 : vector<1x256xi1> to vector<2x256xi1>
      %195 = vector.broadcast %cst_77 : f32 to vector<2x256xf32>
      %196 = arith.select %194, %185, %195 : vector<2x256xi1>, vector<2x256xf32>
      %197 = arith.addf %19, %196 : vector<2x256xf32>
      %cst_78 = arith.constant 0.000000e+00 : f32
      %198 = vector.broadcast %cst_78 : f32 to vector<2x256xf32>
      %cst_79 = arith.constant 0.000000e+00 : f32
      %199 = vector.broadcast %cst_79 : f32 to vector<2x256xf32>
      %cst_80 = arith.constant 0.000000e+00 : f32
      %200 = vector.broadcast %cst_80 : f32 to vector<2x256xf32>
      %cst_81 = arith.constant 0.000000e+00 : f32
      %201 = vector.broadcast %cst_81 : f32 to vector<2x256xf32>
      %c2 = arith.constant 2 : index
      %202 = memref.load %arg2[%c2] : memref<98xf32, #tpu.memory_space<smem>>
      %c51 = arith.constant 51 : index
      %203 = memref.load %arg2[%c51] : memref<98xf32, #tpu.memory_space<smem>>
      %c0_82 = arith.constant 0 : index
      %c79 = arith.constant 79 : index
      %204 = vector.load %arg6[%c0_82, %c79] : memref<2x512xf32, #tpu.memory_space<vmem>>, vector<2x256xf32>
      %205 = vector.broadcast %202 : f32 to vector<2x256xf32>
      %206 = arith.mulf %205, %204 : vector<2x256xf32>
      %c0_83 = arith.constant 0 : index
      %c79_84 = arith.constant 79 : index
      %207 = vector.load %arg7[%c0_83, %c79_84] : memref<2x512xf32, #tpu.memory_space<vmem>>, vector<2x256xf32>
      %208 = vector.broadcast %203 : f32 to vector<2x256xf32>
      %209 = arith.mulf %208, %207 : vector<2x256xf32>
      %210 = arith.addf %198, %206 : vector<2x256xf32>
      %211 = arith.addf %200, %209 : vector<2x256xf32>
      %c9 = arith.constant 9 : index
      %212 = memref.load %arg2[%c9] : memref<98xf32, #tpu.memory_space<smem>>
      %c58 = arith.constant 58 : index
      %213 = memref.load %arg2[%c58] : memref<98xf32, #tpu.memory_space<smem>>
      %c0_85 = arith.constant 0 : index
      %c95 = arith.constant 95 : index
      %214 = vector.load %arg6[%c0_85, %c95] : memref<2x512xf32, #tpu.memory_space<vmem>>, vector<2x256xf32>
      %215 = vector.broadcast %212 : f32 to vector<2x256xf32>
      %216 = arith.mulf %215, %214 : vector<2x256xf32>
      %c0_86 = arith.constant 0 : index
      %c95_87 = arith.constant 95 : index
      %217 = vector.load %arg7[%c0_86, %c95_87] : memref<2x512xf32, #tpu.memory_space<vmem>>, vector<2x256xf32>
      %218 = vector.broadcast %213 : f32 to vector<2x256xf32>
      %219 = arith.mulf %218, %217 : vector<2x256xf32>
      %220 = arith.addf %199, %216 : vector<2x256xf32>
      %221 = arith.addf %201, %219 : vector<2x256xf32>
      %c16 = arith.constant 16 : index
      %222 = memref.load %arg2[%c16] : memref<98xf32, #tpu.memory_space<smem>>
      %c65 = arith.constant 65 : index
      %223 = memref.load %arg2[%c65] : memref<98xf32, #tpu.memory_space<smem>>
      %c0_88 = arith.constant 0 : index
      %c111 = arith.constant 111 : index
      %224 = vector.load %arg6[%c0_88, %c111] : memref<2x512xf32, #tpu.memory_space<vmem>>, vector<2x256xf32>
      %225 = vector.broadcast %222 : f32 to vector<2x256xf32>
      %226 = arith.mulf %225, %224 : vector<2x256xf32>
      %c0_89 = arith.constant 0 : index
      %c111_90 = arith.constant 111 : index
      %227 = vector.load %arg7[%c0_89, %c111_90] : memref<2x512xf32, #tpu.memory_space<vmem>>, vector<2x256xf32>
      %228 = vector.broadcast %223 : f32 to vector<2x256xf32>
      %229 = arith.mulf %228, %227 : vector<2x256xf32>
      %230 = arith.addf %210, %226 : vector<2x256xf32>
      %231 = arith.addf %211, %229 : vector<2x256xf32>
      %c23 = arith.constant 23 : index
      %232 = memref.load %arg2[%c23] : memref<98xf32, #tpu.memory_space<smem>>
      %c72 = arith.constant 72 : index
      %233 = memref.load %arg2[%c72] : memref<98xf32, #tpu.memory_space<smem>>
      %c0_91 = arith.constant 0 : index
      %c127 = arith.constant 127 : index
      %234 = vector.load %arg6[%c0_91, %c127] : memref<2x512xf32, #tpu.memory_space<vmem>>, vector<2x256xf32>
      %235 = vector.broadcast %232 : f32 to vector<2x256xf32>
      %236 = arith.mulf %235, %234 : vector<2x256xf32>
      %c0_92 = arith.constant 0 : index
      %c127_93 = arith.constant 127 : index
      %237 = vector.load %arg7[%c0_92, %c127_93] : memref<2x512xf32, #tpu.memory_space<vmem>>, vector<2x256xf32>
      %238 = vector.broadcast %233 : f32 to vector<2x256xf32>
      %239 = arith.mulf %238, %237 : vector<2x256xf32>
      %240 = arith.addf %220, %236 : vector<2x256xf32>
      %241 = arith.addf %221, %239 : vector<2x256xf32>
      %c30 = arith.constant 30 : index
      %242 = memref.load %arg2[%c30] : memref<98xf32, #tpu.memory_space<smem>>
      %c79_94 = arith.constant 79 : index
      %243 = memref.load %arg2[%c79_94] : memref<98xf32, #tpu.memory_space<smem>>
      %c0_95 = arith.constant 0 : index
      %c143 = arith.constant 143 : index
      %244 = vector.load %arg6[%c0_95, %c143] : memref<2x512xf32, #tpu.memory_space<vmem>>, vector<2x256xf32>
      %245 = vector.broadcast %242 : f32 to vector<2x256xf32>
      %246 = arith.mulf %245, %244 : vector<2x256xf32>
      %c0_96 = arith.constant 0 : index
      %c143_97 = arith.constant 143 : index
      %247 = vector.load %arg7[%c0_96, %c143_97] : memref<2x512xf32, #tpu.memory_space<vmem>>, vector<2x256xf32>
      %248 = vector.broadcast %243 : f32 to vector<2x256xf32>
      %249 = arith.mulf %248, %247 : vector<2x256xf32>
      %250 = arith.addf %230, %246 : vector<2x256xf32>
      %251 = arith.addf %231, %249 : vector<2x256xf32>
      %c37 = arith.constant 37 : index
      %252 = memref.load %arg2[%c37] : memref<98xf32, #tpu.memory_space<smem>>
      %c86 = arith.constant 86 : index
      %253 = memref.load %arg2[%c86] : memref<98xf32, #tpu.memory_space<smem>>
      %c0_98 = arith.constant 0 : index
      %c159 = arith.constant 159 : index
      %254 = vector.load %arg6[%c0_98, %c159] : memref<2x512xf32, #tpu.memory_space<vmem>>, vector<2x256xf32>
      %255 = vector.broadcast %252 : f32 to vector<2x256xf32>
      %256 = arith.mulf %255, %254 : vector<2x256xf32>
      %c0_99 = arith.constant 0 : index
      %c159_100 = arith.constant 159 : index
      %257 = vector.load %arg7[%c0_99, %c159_100] : memref<2x512xf32, #tpu.memory_space<vmem>>, vector<2x256xf32>
      %258 = vector.broadcast %253 : f32 to vector<2x256xf32>
      %259 = arith.mulf %258, %257 : vector<2x256xf32>
      %260 = arith.addf %240, %256 : vector<2x256xf32>
      %261 = arith.addf %241, %259 : vector<2x256xf32>
      %c44 = arith.constant 44 : index
      %262 = memref.load %arg2[%c44] : memref<98xf32, #tpu.memory_space<smem>>
      %c93_101 = arith.constant 93 : index
      %263 = memref.load %arg2[%c93_101] : memref<98xf32, #tpu.memory_space<smem>>
      %c0_102 = arith.constant 0 : index
      %c175 = arith.constant 175 : index
      %264 = vector.load %arg6[%c0_102, %c175] : memref<2x512xf32, #tpu.memory_space<vmem>>, vector<2x256xf32>
      %265 = vector.broadcast %262 : f32 to vector<2x256xf32>
      %266 = arith.mulf %265, %264 : vector<2x256xf32>
      %c0_103 = arith.constant 0 : index
      %c175_104 = arith.constant 175 : index
      %267 = vector.load %arg7[%c0_103, %c175_104] : memref<2x512xf32, #tpu.memory_space<vmem>>, vector<2x256xf32>
      %268 = vector.broadcast %263 : f32 to vector<2x256xf32>
      %269 = arith.mulf %268, %267 : vector<2x256xf32>
      %270 = arith.addf %250, %266 : vector<2x256xf32>
      %271 = arith.addf %251, %269 : vector<2x256xf32>
      %272 = arith.addf %270, %260 : vector<2x256xf32>
      %273 = arith.addf %271, %261 : vector<2x256xf32>
      %274 = arith.addf %272, %273 : vector<2x256xf32>
      %c-1_i32 = arith.constant -1 : i32
      %275 = vector.broadcast %c-1_i32 : i32 to vector<1x256xi32>
      %276 = arith.addi %17, %275 : vector<1x256xi32>
      %c0_i32_105 = arith.constant 0 : i32
      %277 = vector.broadcast %c0_i32_105 : i32 to vector<1x256xi32>
      %278 = arith.cmpi sge, %276, %277 : vector<1x256xi32>
      %c16_i32_106 = arith.constant 16 : i32
      %279 = vector.broadcast %c16_i32_106 : i32 to vector<1x256xi32>
      %280 = arith.cmpi slt, %276, %279 : vector<1x256xi32>
      %281 = arith.andi %278, %280 : vector<1x256xi1>
      %cst_107 = arith.constant 0.000000e+00 : f32
      %282 = vector.shape_cast %281 : vector<1x256xi1> to vector<1x256xi1>
      %283 = vector.broadcast %282 : vector<1x256xi1> to vector<2x256xi1>
      %284 = vector.broadcast %cst_107 : f32 to vector<2x256xf32>
      %285 = arith.select %283, %274, %284 : vector<2x256xi1>, vector<2x256xf32>
      %286 = arith.addf %108, %285 : vector<2x256xf32>
      %cst_108 = arith.constant 0.000000e+00 : f32
      %287 = vector.broadcast %cst_108 : f32 to vector<2x256xf32>
      %cst_109 = arith.constant 0.000000e+00 : f32
      %288 = vector.broadcast %cst_109 : f32 to vector<2x256xf32>
      %cst_110 = arith.constant 0.000000e+00 : f32
      %289 = vector.broadcast %cst_110 : f32 to vector<2x256xf32>
      %cst_111 = arith.constant 0.000000e+00 : f32
      %290 = vector.broadcast %cst_111 : f32 to vector<2x256xf32>
      %c3 = arith.constant 3 : index
      %291 = memref.load %arg2[%c3] : memref<98xf32, #tpu.memory_space<smem>>
      %c52 = arith.constant 52 : index
      %292 = memref.load %arg2[%c52] : memref<98xf32, #tpu.memory_space<smem>>
      %c0_112 = arith.constant 0 : index
      %c80 = arith.constant 80 : index
      %293 = vector.load %arg6[%c0_112, %c80] : memref<2x512xf32, #tpu.memory_space<vmem>>, vector<2x256xf32>
      %294 = vector.broadcast %291 : f32 to vector<2x256xf32>
      %295 = arith.mulf %294, %293 : vector<2x256xf32>
      %c0_113 = arith.constant 0 : index
      %c80_114 = arith.constant 80 : index
      %296 = vector.load %arg7[%c0_113, %c80_114] : memref<2x512xf32, #tpu.memory_space<vmem>>, vector<2x256xf32>
      %297 = vector.broadcast %292 : f32 to vector<2x256xf32>
      %298 = arith.mulf %297, %296 : vector<2x256xf32>
      %299 = arith.addf %287, %295 : vector<2x256xf32>
      %300 = arith.addf %289, %298 : vector<2x256xf32>
      %c10 = arith.constant 10 : index
      %301 = memref.load %arg2[%c10] : memref<98xf32, #tpu.memory_space<smem>>
      %c59 = arith.constant 59 : index
      %302 = memref.load %arg2[%c59] : memref<98xf32, #tpu.memory_space<smem>>
      %c0_115 = arith.constant 0 : index
      %c96 = arith.constant 96 : index
      %303 = vector.load %arg6[%c0_115, %c96] : memref<2x512xf32, #tpu.memory_space<vmem>>, vector<2x256xf32>
      %304 = vector.broadcast %301 : f32 to vector<2x256xf32>
      %305 = arith.mulf %304, %303 : vector<2x256xf32>
      %c0_116 = arith.constant 0 : index
      %c96_117 = arith.constant 96 : index
      %306 = vector.load %arg7[%c0_116, %c96_117] : memref<2x512xf32, #tpu.memory_space<vmem>>, vector<2x256xf32>
      %307 = vector.broadcast %302 : f32 to vector<2x256xf32>
      %308 = arith.mulf %307, %306 : vector<2x256xf32>
      %309 = arith.addf %288, %305 : vector<2x256xf32>
      %310 = arith.addf %290, %308 : vector<2x256xf32>
      %c17 = arith.constant 17 : index
      %311 = memref.load %arg2[%c17] : memref<98xf32, #tpu.memory_space<smem>>
      %c66 = arith.constant 66 : index
      %312 = memref.load %arg2[%c66] : memref<98xf32, #tpu.memory_space<smem>>
      %c0_118 = arith.constant 0 : index
      %c112 = arith.constant 112 : index
      %313 = vector.load %arg6[%c0_118, %c112] : memref<2x512xf32, #tpu.memory_space<vmem>>, vector<2x256xf32>
      %314 = vector.broadcast %311 : f32 to vector<2x256xf32>
      %315 = arith.mulf %314, %313 : vector<2x256xf32>
      %c0_119 = arith.constant 0 : index
      %c112_120 = arith.constant 112 : index
      %316 = vector.load %arg7[%c0_119, %c112_120] : memref<2x512xf32, #tpu.memory_space<vmem>>, vector<2x256xf32>
      %317 = vector.broadcast %312 : f32 to vector<2x256xf32>
      %318 = arith.mulf %317, %316 : vector<2x256xf32>
      %319 = arith.addf %299, %315 : vector<2x256xf32>
      %320 = arith.addf %300, %318 : vector<2x256xf32>
      %c24 = arith.constant 24 : index
      %321 = memref.load %arg2[%c24] : memref<98xf32, #tpu.memory_space<smem>>
      %c73 = arith.constant 73 : index
      %322 = memref.load %arg2[%c73] : memref<98xf32, #tpu.memory_space<smem>>
      %c0_121 = arith.constant 0 : index
      %c128 = arith.constant 128 : index
      %323 = vector.load %arg6[%c0_121, %c128] : memref<2x512xf32, #tpu.memory_space<vmem>>, vector<2x256xf32>
      %324 = vector.broadcast %321 : f32 to vector<2x256xf32>
      %325 = arith.mulf %324, %323 : vector<2x256xf32>
      %c0_122 = arith.constant 0 : index
      %c128_123 = arith.constant 128 : index
      %326 = vector.load %arg7[%c0_122, %c128_123] : memref<2x512xf32, #tpu.memory_space<vmem>>, vector<2x256xf32>
      %327 = vector.broadcast %322 : f32 to vector<2x256xf32>
      %328 = arith.mulf %327, %326 : vector<2x256xf32>
      %329 = arith.addf %309, %325 : vector<2x256xf32>
      %330 = arith.addf %310, %328 : vector<2x256xf32>
      %c31 = arith.constant 31 : index
      %331 = memref.load %arg2[%c31] : memref<98xf32, #tpu.memory_space<smem>>
      %c80_124 = arith.constant 80 : index
      %332 = memref.load %arg2[%c80_124] : memref<98xf32, #tpu.memory_space<smem>>
      %c0_125 = arith.constant 0 : index
      %c144 = arith.constant 144 : index
      %333 = vector.load %arg6[%c0_125, %c144] : memref<2x512xf32, #tpu.memory_space<vmem>>, vector<2x256xf32>
      %334 = vector.broadcast %331 : f32 to vector<2x256xf32>
      %335 = arith.mulf %334, %333 : vector<2x256xf32>
      %c0_126 = arith.constant 0 : index
      %c144_127 = arith.constant 144 : index
      %336 = vector.load %arg7[%c0_126, %c144_127] : memref<2x512xf32, #tpu.memory_space<vmem>>, vector<2x256xf32>
      %337 = vector.broadcast %332 : f32 to vector<2x256xf32>
      %338 = arith.mulf %337, %336 : vector<2x256xf32>
      %339 = arith.addf %319, %335 : vector<2x256xf32>
      %340 = arith.addf %320, %338 : vector<2x256xf32>
      %c38 = arith.constant 38 : index
      %341 = memref.load %arg2[%c38] : memref<98xf32, #tpu.memory_space<smem>>
      %c87 = arith.constant 87 : index
      %342 = memref.load %arg2[%c87] : memref<98xf32, #tpu.memory_space<smem>>
      %c0_128 = arith.constant 0 : index
      %c160 = arith.constant 160 : index
      %343 = vector.load %arg6[%c0_128, %c160] : memref<2x512xf32, #tpu.memory_space<vmem>>, vector<2x256xf32>
      %344 = vector.broadcast %341 : f32 to vector<2x256xf32>
      %345 = arith.mulf %344, %343 : vector<2x256xf32>
      %c0_129 = arith.constant 0 : index
      %c160_130 = arith.constant 160 : index
      %346 = vector.load %arg7[%c0_129, %c160_130] : memref<2x512xf32, #tpu.memory_space<vmem>>, vector<2x256xf32>
      %347 = vector.broadcast %342 : f32 to vector<2x256xf32>
      %348 = arith.mulf %347, %346 : vector<2x256xf32>
      %349 = arith.addf %329, %345 : vector<2x256xf32>
      %350 = arith.addf %330, %348 : vector<2x256xf32>
      %c45 = arith.constant 45 : index
      %351 = memref.load %arg2[%c45] : memref<98xf32, #tpu.memory_space<smem>>
      %c94_131 = arith.constant 94 : index
      %352 = memref.load %arg2[%c94_131] : memref<98xf32, #tpu.memory_space<smem>>
      %c0_132 = arith.constant 0 : index
      %c176 = arith.constant 176 : index
      %353 = vector.load %arg6[%c0_132, %c176] : memref<2x512xf32, #tpu.memory_space<vmem>>, vector<2x256xf32>
      %354 = vector.broadcast %351 : f32 to vector<2x256xf32>
      %355 = arith.mulf %354, %353 : vector<2x256xf32>
      %c0_133 = arith.constant 0 : index
      %c176_134 = arith.constant 176 : index
      %356 = vector.load %arg7[%c0_133, %c176_134] : memref<2x512xf32, #tpu.memory_space<vmem>>, vector<2x256xf32>
      %357 = vector.broadcast %352 : f32 to vector<2x256xf32>
      %358 = arith.mulf %357, %356 : vector<2x256xf32>
      %359 = arith.addf %339, %355 : vector<2x256xf32>
      %360 = arith.addf %340, %358 : vector<2x256xf32>
      %361 = arith.addf %359, %349 : vector<2x256xf32>
      %362 = arith.addf %360, %350 : vector<2x256xf32>
      %363 = arith.addf %361, %362 : vector<2x256xf32>
      %c0_i32_135 = arith.constant 0 : i32
      %364 = vector.broadcast %c0_i32_135 : i32 to vector<1x256xi32>
      %365 = arith.addi %17, %364 : vector<1x256xi32>
      %c0_i32_136 = arith.constant 0 : i32
      %366 = vector.broadcast %c0_i32_136 : i32 to vector<1x256xi32>
      %367 = arith.cmpi sge, %365, %366 : vector<1x256xi32>
      %c16_i32_137 = arith.constant 16 : i32
      %368 = vector.broadcast %c16_i32_137 : i32 to vector<1x256xi32>
      %369 = arith.cmpi slt, %365, %368 : vector<1x256xi32>
      %370 = arith.andi %367, %369 : vector<1x256xi1>
      %cst_138 = arith.constant 0.000000e+00 : f32
      %371 = vector.shape_cast %370 : vector<1x256xi1> to vector<1x256xi1>
      %372 = vector.broadcast %371 : vector<1x256xi1> to vector<2x256xi1>
      %373 = vector.broadcast %cst_138 : f32 to vector<2x256xf32>
      %374 = arith.select %372, %363, %373 : vector<2x256xi1>, vector<2x256xf32>
      %375 = arith.addf %197, %374 : vector<2x256xf32>
      %cst_139 = arith.constant 0.000000e+00 : f32
      %376 = vector.broadcast %cst_139 : f32 to vector<2x256xf32>
      %cst_140 = arith.constant 0.000000e+00 : f32
      %377 = vector.broadcast %cst_140 : f32 to vector<2x256xf32>
      %cst_141 = arith.constant 0.000000e+00 : f32
      %378 = vector.broadcast %cst_141 : f32 to vector<2x256xf32>
      %cst_142 = arith.constant 0.000000e+00 : f32
      %379 = vector.broadcast %cst_142 : f32 to vector<2x256xf32>
      %c4 = arith.constant 4 : index
      %380 = memref.load %arg2[%c4] : memref<98xf32, #tpu.memory_space<smem>>
      %c53 = arith.constant 53 : index
      %381 = memref.load %arg2[%c53] : memref<98xf32, #tpu.memory_space<smem>>
      %c0_143 = arith.constant 0 : index
      %c81 = arith.constant 81 : index
      %382 = vector.load %arg6[%c0_143, %c81] : memref<2x512xf32, #tpu.memory_space<vmem>>, vector<2x256xf32>
      %383 = vector.broadcast %380 : f32 to vector<2x256xf32>
      %384 = arith.mulf %383, %382 : vector<2x256xf32>
      %c0_144 = arith.constant 0 : index
      %c81_145 = arith.constant 81 : index
      %385 = vector.load %arg7[%c0_144, %c81_145] : memref<2x512xf32, #tpu.memory_space<vmem>>, vector<2x256xf32>
      %386 = vector.broadcast %381 : f32 to vector<2x256xf32>
      %387 = arith.mulf %386, %385 : vector<2x256xf32>
      %388 = arith.addf %376, %384 : vector<2x256xf32>
      %389 = arith.addf %378, %387 : vector<2x256xf32>
      %c11 = arith.constant 11 : index
      %390 = memref.load %arg2[%c11] : memref<98xf32, #tpu.memory_space<smem>>
      %c60 = arith.constant 60 : index
      %391 = memref.load %arg2[%c60] : memref<98xf32, #tpu.memory_space<smem>>
      %c0_146 = arith.constant 0 : index
      %c97 = arith.constant 97 : index
      %392 = vector.load %arg6[%c0_146, %c97] : memref<2x512xf32, #tpu.memory_space<vmem>>, vector<2x256xf32>
      %393 = vector.broadcast %390 : f32 to vector<2x256xf32>
      %394 = arith.mulf %393, %392 : vector<2x256xf32>
      %c0_147 = arith.constant 0 : index
      %c97_148 = arith.constant 97 : index
      %395 = vector.load %arg7[%c0_147, %c97_148] : memref<2x512xf32, #tpu.memory_space<vmem>>, vector<2x256xf32>
      %396 = vector.broadcast %391 : f32 to vector<2x256xf32>
      %397 = arith.mulf %396, %395 : vector<2x256xf32>
      %398 = arith.addf %377, %394 : vector<2x256xf32>
      %399 = arith.addf %379, %397 : vector<2x256xf32>
      %c18 = arith.constant 18 : index
      %400 = memref.load %arg2[%c18] : memref<98xf32, #tpu.memory_space<smem>>
      %c67 = arith.constant 67 : index
      %401 = memref.load %arg2[%c67] : memref<98xf32, #tpu.memory_space<smem>>
      %c0_149 = arith.constant 0 : index
      %c113 = arith.constant 113 : index
      %402 = vector.load %arg6[%c0_149, %c113] : memref<2x512xf32, #tpu.memory_space<vmem>>, vector<2x256xf32>
      %403 = vector.broadcast %400 : f32 to vector<2x256xf32>
      %404 = arith.mulf %403, %402 : vector<2x256xf32>
      %c0_150 = arith.constant 0 : index
      %c113_151 = arith.constant 113 : index
      %405 = vector.load %arg7[%c0_150, %c113_151] : memref<2x512xf32, #tpu.memory_space<vmem>>, vector<2x256xf32>
      %406 = vector.broadcast %401 : f32 to vector<2x256xf32>
      %407 = arith.mulf %406, %405 : vector<2x256xf32>
      %408 = arith.addf %388, %404 : vector<2x256xf32>
      %409 = arith.addf %389, %407 : vector<2x256xf32>
      %c25 = arith.constant 25 : index
      %410 = memref.load %arg2[%c25] : memref<98xf32, #tpu.memory_space<smem>>
      %c74 = arith.constant 74 : index
      %411 = memref.load %arg2[%c74] : memref<98xf32, #tpu.memory_space<smem>>
      %c0_152 = arith.constant 0 : index
      %c129 = arith.constant 129 : index
      %412 = vector.load %arg6[%c0_152, %c129] : memref<2x512xf32, #tpu.memory_space<vmem>>, vector<2x256xf32>
      %413 = vector.broadcast %410 : f32 to vector<2x256xf32>
      %414 = arith.mulf %413, %412 : vector<2x256xf32>
      %c0_153 = arith.constant 0 : index
      %c129_154 = arith.constant 129 : index
      %415 = vector.load %arg7[%c0_153, %c129_154] : memref<2x512xf32, #tpu.memory_space<vmem>>, vector<2x256xf32>
      %416 = vector.broadcast %411 : f32 to vector<2x256xf32>
      %417 = arith.mulf %416, %415 : vector<2x256xf32>
      %418 = arith.addf %398, %414 : vector<2x256xf32>
      %419 = arith.addf %399, %417 : vector<2x256xf32>
      %c32 = arith.constant 32 : index
      %420 = memref.load %arg2[%c32] : memref<98xf32, #tpu.memory_space<smem>>
      %c81_155 = arith.constant 81 : index
      %421 = memref.load %arg2[%c81_155] : memref<98xf32, #tpu.memory_space<smem>>
      %c0_156 = arith.constant 0 : index
      %c145 = arith.constant 145 : index
      %422 = vector.load %arg6[%c0_156, %c145] : memref<2x512xf32, #tpu.memory_space<vmem>>, vector<2x256xf32>
      %423 = vector.broadcast %420 : f32 to vector<2x256xf32>
      %424 = arith.mulf %423, %422 : vector<2x256xf32>
      %c0_157 = arith.constant 0 : index
      %c145_158 = arith.constant 145 : index
      %425 = vector.load %arg7[%c0_157, %c145_158] : memref<2x512xf32, #tpu.memory_space<vmem>>, vector<2x256xf32>
      %426 = vector.broadcast %421 : f32 to vector<2x256xf32>
      %427 = arith.mulf %426, %425 : vector<2x256xf32>
      %428 = arith.addf %408, %424 : vector<2x256xf32>
      %429 = arith.addf %409, %427 : vector<2x256xf32>
      %c39 = arith.constant 39 : index
      %430 = memref.load %arg2[%c39] : memref<98xf32, #tpu.memory_space<smem>>
      %c88 = arith.constant 88 : index
      %431 = memref.load %arg2[%c88] : memref<98xf32, #tpu.memory_space<smem>>
      %c0_159 = arith.constant 0 : index
      %c161 = arith.constant 161 : index
      %432 = vector.load %arg6[%c0_159, %c161] : memref<2x512xf32, #tpu.memory_space<vmem>>, vector<2x256xf32>
      %433 = vector.broadcast %430 : f32 to vector<2x256xf32>
      %434 = arith.mulf %433, %432 : vector<2x256xf32>
      %c0_160 = arith.constant 0 : index
      %c161_161 = arith.constant 161 : index
      %435 = vector.load %arg7[%c0_160, %c161_161] : memref<2x512xf32, #tpu.memory_space<vmem>>, vector<2x256xf32>
      %436 = vector.broadcast %431 : f32 to vector<2x256xf32>
      %437 = arith.mulf %436, %435 : vector<2x256xf32>
      %438 = arith.addf %418, %434 : vector<2x256xf32>
      %439 = arith.addf %419, %437 : vector<2x256xf32>
      %c46 = arith.constant 46 : index
      %440 = memref.load %arg2[%c46] : memref<98xf32, #tpu.memory_space<smem>>
      %c95_162 = arith.constant 95 : index
      %441 = memref.load %arg2[%c95_162] : memref<98xf32, #tpu.memory_space<smem>>
      %c0_163 = arith.constant 0 : index
      %c177 = arith.constant 177 : index
      %442 = vector.load %arg6[%c0_163, %c177] : memref<2x512xf32, #tpu.memory_space<vmem>>, vector<2x256xf32>
      %443 = vector.broadcast %440 : f32 to vector<2x256xf32>
      %444 = arith.mulf %443, %442 : vector<2x256xf32>
      %c0_164 = arith.constant 0 : index
      %c177_165 = arith.constant 177 : index
      %445 = vector.load %arg7[%c0_164, %c177_165] : memref<2x512xf32, #tpu.memory_space<vmem>>, vector<2x256xf32>
      %446 = vector.broadcast %441 : f32 to vector<2x256xf32>
      %447 = arith.mulf %446, %445 : vector<2x256xf32>
      %448 = arith.addf %428, %444 : vector<2x256xf32>
      %449 = arith.addf %429, %447 : vector<2x256xf32>
      %450 = arith.addf %448, %438 : vector<2x256xf32>
      %451 = arith.addf %449, %439 : vector<2x256xf32>
      %452 = arith.addf %450, %451 : vector<2x256xf32>
      %c1_i32 = arith.constant 1 : i32
      %453 = vector.broadcast %c1_i32 : i32 to vector<1x256xi32>
      %454 = arith.addi %17, %453 : vector<1x256xi32>
      %c0_i32_166 = arith.constant 0 : i32
      %455 = vector.broadcast %c0_i32_166 : i32 to vector<1x256xi32>
      %456 = arith.cmpi sge, %454, %455 : vector<1x256xi32>
      %c16_i32_167 = arith.constant 16 : i32
      %457 = vector.broadcast %c16_i32_167 : i32 to vector<1x256xi32>
      %458 = arith.cmpi slt, %454, %457 : vector<1x256xi32>
      %459 = arith.andi %456, %458 : vector<1x256xi1>
      %cst_168 = arith.constant 0.000000e+00 : f32
      %460 = vector.shape_cast %459 : vector<1x256xi1> to vector<1x256xi1>
      %461 = vector.broadcast %460 : vector<1x256xi1> to vector<2x256xi1>
      %462 = vector.broadcast %cst_168 : f32 to vector<2x256xf32>
      %463 = arith.select %461, %452, %462 : vector<2x256xi1>, vector<2x256xf32>
      %464 = arith.addf %286, %463 : vector<2x256xf32>
      %cst_169 = arith.constant 0.000000e+00 : f32
      %465 = vector.broadcast %cst_169 : f32 to vector<2x256xf32>
      %cst_170 = arith.constant 0.000000e+00 : f32
      %466 = vector.broadcast %cst_170 : f32 to vector<2x256xf32>
      %cst_171 = arith.constant 0.000000e+00 : f32
      %467 = vector.broadcast %cst_171 : f32 to vector<2x256xf32>
      %cst_172 = arith.constant 0.000000e+00 : f32
      %468 = vector.broadcast %cst_172 : f32 to vector<2x256xf32>
      %c5 = arith.constant 5 : index
      %469 = memref.load %arg2[%c5] : memref<98xf32, #tpu.memory_space<smem>>
      %c54 = arith.constant 54 : index
      %470 = memref.load %arg2[%c54] : memref<98xf32, #tpu.memory_space<smem>>
      %c0_173 = arith.constant 0 : index
      %c82 = arith.constant 82 : index
      %471 = vector.load %arg6[%c0_173, %c82] : memref<2x512xf32, #tpu.memory_space<vmem>>, vector<2x256xf32>
      %472 = vector.broadcast %469 : f32 to vector<2x256xf32>
      %473 = arith.mulf %472, %471 : vector<2x256xf32>
      %c0_174 = arith.constant 0 : index
      %c82_175 = arith.constant 82 : index
      %474 = vector.load %arg7[%c0_174, %c82_175] : memref<2x512xf32, #tpu.memory_space<vmem>>, vector<2x256xf32>
      %475 = vector.broadcast %470 : f32 to vector<2x256xf32>
      %476 = arith.mulf %475, %474 : vector<2x256xf32>
      %477 = arith.addf %465, %473 : vector<2x256xf32>
      %478 = arith.addf %467, %476 : vector<2x256xf32>
      %c12 = arith.constant 12 : index
      %479 = memref.load %arg2[%c12] : memref<98xf32, #tpu.memory_space<smem>>
      %c61 = arith.constant 61 : index
      %480 = memref.load %arg2[%c61] : memref<98xf32, #tpu.memory_space<smem>>
      %c0_176 = arith.constant 0 : index
      %c98 = arith.constant 98 : index
      %481 = vector.load %arg6[%c0_176, %c98] : memref<2x512xf32, #tpu.memory_space<vmem>>, vector<2x256xf32>
      %482 = vector.broadcast %479 : f32 to vector<2x256xf32>
      %483 = arith.mulf %482, %481 : vector<2x256xf32>
      %c0_177 = arith.constant 0 : index
      %c98_178 = arith.constant 98 : index
      %484 = vector.load %arg7[%c0_177, %c98_178] : memref<2x512xf32, #tpu.memory_space<vmem>>, vector<2x256xf32>
      %485 = vector.broadcast %480 : f32 to vector<2x256xf32>
      %486 = arith.mulf %485, %484 : vector<2x256xf32>
      %487 = arith.addf %466, %483 : vector<2x256xf32>
      %488 = arith.addf %468, %486 : vector<2x256xf32>
      %c19 = arith.constant 19 : index
      %489 = memref.load %arg2[%c19] : memref<98xf32, #tpu.memory_space<smem>>
      %c68 = arith.constant 68 : index
      %490 = memref.load %arg2[%c68] : memref<98xf32, #tpu.memory_space<smem>>
      %c0_179 = arith.constant 0 : index
      %c114 = arith.constant 114 : index
      %491 = vector.load %arg6[%c0_179, %c114] : memref<2x512xf32, #tpu.memory_space<vmem>>, vector<2x256xf32>
      %492 = vector.broadcast %489 : f32 to vector<2x256xf32>
      %493 = arith.mulf %492, %491 : vector<2x256xf32>
      %c0_180 = arith.constant 0 : index
      %c114_181 = arith.constant 114 : index
      %494 = vector.load %arg7[%c0_180, %c114_181] : memref<2x512xf32, #tpu.memory_space<vmem>>, vector<2x256xf32>
      %495 = vector.broadcast %490 : f32 to vector<2x256xf32>
      %496 = arith.mulf %495, %494 : vector<2x256xf32>
      %497 = arith.addf %477, %493 : vector<2x256xf32>
      %498 = arith.addf %478, %496 : vector<2x256xf32>
      %c26 = arith.constant 26 : index
      %499 = memref.load %arg2[%c26] : memref<98xf32, #tpu.memory_space<smem>>
      %c75 = arith.constant 75 : index
      %500 = memref.load %arg2[%c75] : memref<98xf32, #tpu.memory_space<smem>>
      %c0_182 = arith.constant 0 : index
      %c130 = arith.constant 130 : index
      %501 = vector.load %arg6[%c0_182, %c130] : memref<2x512xf32, #tpu.memory_space<vmem>>, vector<2x256xf32>
      %502 = vector.broadcast %499 : f32 to vector<2x256xf32>
      %503 = arith.mulf %502, %501 : vector<2x256xf32>
      %c0_183 = arith.constant 0 : index
      %c130_184 = arith.constant 130 : index
      %504 = vector.load %arg7[%c0_183, %c130_184] : memref<2x512xf32, #tpu.memory_space<vmem>>, vector<2x256xf32>
      %505 = vector.broadcast %500 : f32 to vector<2x256xf32>
      %506 = arith.mulf %505, %504 : vector<2x256xf32>
      %507 = arith.addf %487, %503 : vector<2x256xf32>
      %508 = arith.addf %488, %506 : vector<2x256xf32>
      %c33 = arith.constant 33 : index
      %509 = memref.load %arg2[%c33] : memref<98xf32, #tpu.memory_space<smem>>
      %c82_185 = arith.constant 82 : index
      %510 = memref.load %arg2[%c82_185] : memref<98xf32, #tpu.memory_space<smem>>
      %c0_186 = arith.constant 0 : index
      %c146 = arith.constant 146 : index
      %511 = vector.load %arg6[%c0_186, %c146] : memref<2x512xf32, #tpu.memory_space<vmem>>, vector<2x256xf32>
      %512 = vector.broadcast %509 : f32 to vector<2x256xf32>
      %513 = arith.mulf %512, %511 : vector<2x256xf32>
      %c0_187 = arith.constant 0 : index
      %c146_188 = arith.constant 146 : index
      %514 = vector.load %arg7[%c0_187, %c146_188] : memref<2x512xf32, #tpu.memory_space<vmem>>, vector<2x256xf32>
      %515 = vector.broadcast %510 : f32 to vector<2x256xf32>
      %516 = arith.mulf %515, %514 : vector<2x256xf32>
      %517 = arith.addf %497, %513 : vector<2x256xf32>
      %518 = arith.addf %498, %516 : vector<2x256xf32>
      %c40 = arith.constant 40 : index
      %519 = memref.load %arg2[%c40] : memref<98xf32, #tpu.memory_space<smem>>
      %c89 = arith.constant 89 : index
      %520 = memref.load %arg2[%c89] : memref<98xf32, #tpu.memory_space<smem>>
      %c0_189 = arith.constant 0 : index
      %c162 = arith.constant 162 : index
      %521 = vector.load %arg6[%c0_189, %c162] : memref<2x512xf32, #tpu.memory_space<vmem>>, vector<2x256xf32>
      %522 = vector.broadcast %519 : f32 to vector<2x256xf32>
      %523 = arith.mulf %522, %521 : vector<2x256xf32>
      %c0_190 = arith.constant 0 : index
      %c162_191 = arith.constant 162 : index
      %524 = vector.load %arg7[%c0_190, %c162_191] : memref<2x512xf32, #tpu.memory_space<vmem>>, vector<2x256xf32>
      %525 = vector.broadcast %520 : f32 to vector<2x256xf32>
      %526 = arith.mulf %525, %524 : vector<2x256xf32>
      %527 = arith.addf %507, %523 : vector<2x256xf32>
      %528 = arith.addf %508, %526 : vector<2x256xf32>
      %c47 = arith.constant 47 : index
      %529 = memref.load %arg2[%c47] : memref<98xf32, #tpu.memory_space<smem>>
      %c96_192 = arith.constant 96 : index
      %530 = memref.load %arg2[%c96_192] : memref<98xf32, #tpu.memory_space<smem>>
      %c0_193 = arith.constant 0 : index
      %c178 = arith.constant 178 : index
      %531 = vector.load %arg6[%c0_193, %c178] : memref<2x512xf32, #tpu.memory_space<vmem>>, vector<2x256xf32>
      %532 = vector.broadcast %529 : f32 to vector<2x256xf32>
      %533 = arith.mulf %532, %531 : vector<2x256xf32>
      %c0_194 = arith.constant 0 : index
      %c178_195 = arith.constant 178 : index
      %534 = vector.load %arg7[%c0_194, %c178_195] : memref<2x512xf32, #tpu.memory_space<vmem>>, vector<2x256xf32>
      %535 = vector.broadcast %530 : f32 to vector<2x256xf32>
      %536 = arith.mulf %535, %534 : vector<2x256xf32>
      %537 = arith.addf %517, %533 : vector<2x256xf32>
      %538 = arith.addf %518, %536 : vector<2x256xf32>
      %539 = arith.addf %537, %527 : vector<2x256xf32>
      %540 = arith.addf %538, %528 : vector<2x256xf32>
      %541 = arith.addf %539, %540 : vector<2x256xf32>
      %c2_i32 = arith.constant 2 : i32
      %542 = vector.broadcast %c2_i32 : i32 to vector<1x256xi32>
      %543 = arith.addi %17, %542 : vector<1x256xi32>
      %c0_i32_196 = arith.constant 0 : i32
      %544 = vector.broadcast %c0_i32_196 : i32 to vector<1x256xi32>
      %545 = arith.cmpi sge, %543, %544 : vector<1x256xi32>
      %c16_i32_197 = arith.constant 16 : i32
      %546 = vector.broadcast %c16_i32_197 : i32 to vector<1x256xi32>
      %547 = arith.cmpi slt, %543, %546 : vector<1x256xi32>
      %548 = arith.andi %545, %547 : vector<1x256xi1>
      %cst_198 = arith.constant 0.000000e+00 : f32
      %549 = vector.shape_cast %548 : vector<1x256xi1> to vector<1x256xi1>
      %550 = vector.broadcast %549 : vector<1x256xi1> to vector<2x256xi1>
      %551 = vector.broadcast %cst_198 : f32 to vector<2x256xf32>
      %552 = arith.select %550, %541, %551 : vector<2x256xi1>, vector<2x256xf32>
      %553 = arith.addf %375, %552 : vector<2x256xf32>
      %cst_199 = arith.constant 0.000000e+00 : f32
      %554 = vector.broadcast %cst_199 : f32 to vector<2x256xf32>
      %cst_200 = arith.constant 0.000000e+00 : f32
      %555 = vector.broadcast %cst_200 : f32 to vector<2x256xf32>
      %cst_201 = arith.constant 0.000000e+00 : f32
      %556 = vector.broadcast %cst_201 : f32 to vector<2x256xf32>
      %cst_202 = arith.constant 0.000000e+00 : f32
      %557 = vector.broadcast %cst_202 : f32 to vector<2x256xf32>
      %c6 = arith.constant 6 : index
      %558 = memref.load %arg2[%c6] : memref<98xf32, #tpu.memory_space<smem>>
      %c55 = arith.constant 55 : index
      %559 = memref.load %arg2[%c55] : memref<98xf32, #tpu.memory_space<smem>>
      %c0_203 = arith.constant 0 : index
      %c83 = arith.constant 83 : index
      %560 = vector.load %arg6[%c0_203, %c83] : memref<2x512xf32, #tpu.memory_space<vmem>>, vector<2x256xf32>
      %561 = vector.broadcast %558 : f32 to vector<2x256xf32>
      %562 = arith.mulf %561, %560 : vector<2x256xf32>
      %c0_204 = arith.constant 0 : index
      %c83_205 = arith.constant 83 : index
      %563 = vector.load %arg7[%c0_204, %c83_205] : memref<2x512xf32, #tpu.memory_space<vmem>>, vector<2x256xf32>
      %564 = vector.broadcast %559 : f32 to vector<2x256xf32>
      %565 = arith.mulf %564, %563 : vector<2x256xf32>
      %566 = arith.addf %554, %562 : vector<2x256xf32>
      %567 = arith.addf %556, %565 : vector<2x256xf32>
      %c13 = arith.constant 13 : index
      %568 = memref.load %arg2[%c13] : memref<98xf32, #tpu.memory_space<smem>>
      %c62 = arith.constant 62 : index
      %569 = memref.load %arg2[%c62] : memref<98xf32, #tpu.memory_space<smem>>
      %c0_206 = arith.constant 0 : index
      %c99 = arith.constant 99 : index
      %570 = vector.load %arg6[%c0_206, %c99] : memref<2x512xf32, #tpu.memory_space<vmem>>, vector<2x256xf32>
      %571 = vector.broadcast %568 : f32 to vector<2x256xf32>
      %572 = arith.mulf %571, %570 : vector<2x256xf32>
      %c0_207 = arith.constant 0 : index
      %c99_208 = arith.constant 99 : index
      %573 = vector.load %arg7[%c0_207, %c99_208] : memref<2x512xf32, #tpu.memory_space<vmem>>, vector<2x256xf32>
      %574 = vector.broadcast %569 : f32 to vector<2x256xf32>
      %575 = arith.mulf %574, %573 : vector<2x256xf32>
      %576 = arith.addf %555, %572 : vector<2x256xf32>
      %577 = arith.addf %557, %575 : vector<2x256xf32>
      %c20 = arith.constant 20 : index
      %578 = memref.load %arg2[%c20] : memref<98xf32, #tpu.memory_space<smem>>
      %c69 = arith.constant 69 : index
      %579 = memref.load %arg2[%c69] : memref<98xf32, #tpu.memory_space<smem>>
      %c0_209 = arith.constant 0 : index
      %c115 = arith.constant 115 : index
      %580 = vector.load %arg6[%c0_209, %c115] : memref<2x512xf32, #tpu.memory_space<vmem>>, vector<2x256xf32>
      %581 = vector.broadcast %578 : f32 to vector<2x256xf32>
      %582 = arith.mulf %581, %580 : vector<2x256xf32>
      %c0_210 = arith.constant 0 : index
      %c115_211 = arith.constant 115 : index
      %583 = vector.load %arg7[%c0_210, %c115_211] : memref<2x512xf32, #tpu.memory_space<vmem>>, vector<2x256xf32>
      %584 = vector.broadcast %579 : f32 to vector<2x256xf32>
      %585 = arith.mulf %584, %583 : vector<2x256xf32>
      %586 = arith.addf %566, %582 : vector<2x256xf32>
      %587 = arith.addf %567, %585 : vector<2x256xf32>
      %c27 = arith.constant 27 : index
      %588 = memref.load %arg2[%c27] : memref<98xf32, #tpu.memory_space<smem>>
      %c76 = arith.constant 76 : index
      %589 = memref.load %arg2[%c76] : memref<98xf32, #tpu.memory_space<smem>>
      %c0_212 = arith.constant 0 : index
      %c131 = arith.constant 131 : index
      %590 = vector.load %arg6[%c0_212, %c131] : memref<2x512xf32, #tpu.memory_space<vmem>>, vector<2x256xf32>
      %591 = vector.broadcast %588 : f32 to vector<2x256xf32>
      %592 = arith.mulf %591, %590 : vector<2x256xf32>
      %c0_213 = arith.constant 0 : index
      %c131_214 = arith.constant 131 : index
      %593 = vector.load %arg7[%c0_213, %c131_214] : memref<2x512xf32, #tpu.memory_space<vmem>>, vector<2x256xf32>
      %594 = vector.broadcast %589 : f32 to vector<2x256xf32>
      %595 = arith.mulf %594, %593 : vector<2x256xf32>
      %596 = arith.addf %576, %592 : vector<2x256xf32>
      %597 = arith.addf %577, %595 : vector<2x256xf32>
      %c34 = arith.constant 34 : index
      %598 = memref.load %arg2[%c34] : memref<98xf32, #tpu.memory_space<smem>>
      %c83_215 = arith.constant 83 : index
      %599 = memref.load %arg2[%c83_215] : memref<98xf32, #tpu.memory_space<smem>>
      %c0_216 = arith.constant 0 : index
      %c147 = arith.constant 147 : index
      %600 = vector.load %arg6[%c0_216, %c147] : memref<2x512xf32, #tpu.memory_space<vmem>>, vector<2x256xf32>
      %601 = vector.broadcast %598 : f32 to vector<2x256xf32>
      %602 = arith.mulf %601, %600 : vector<2x256xf32>
      %c0_217 = arith.constant 0 : index
      %c147_218 = arith.constant 147 : index
      %603 = vector.load %arg7[%c0_217, %c147_218] : memref<2x512xf32, #tpu.memory_space<vmem>>, vector<2x256xf32>
      %604 = vector.broadcast %599 : f32 to vector<2x256xf32>
      %605 = arith.mulf %604, %603 : vector<2x256xf32>
      %606 = arith.addf %586, %602 : vector<2x256xf32>
      %607 = arith.addf %587, %605 : vector<2x256xf32>
      %c41 = arith.constant 41 : index
      %608 = memref.load %arg2[%c41] : memref<98xf32, #tpu.memory_space<smem>>
      %c90 = arith.constant 90 : index
      %609 = memref.load %arg2[%c90] : memref<98xf32, #tpu.memory_space<smem>>
      %c0_219 = arith.constant 0 : index
      %c163 = arith.constant 163 : index
      %610 = vector.load %arg6[%c0_219, %c163] : memref<2x512xf32, #tpu.memory_space<vmem>>, vector<2x256xf32>
      %611 = vector.broadcast %608 : f32 to vector<2x256xf32>
      %612 = arith.mulf %611, %610 : vector<2x256xf32>
      %c0_220 = arith.constant 0 : index
      %c163_221 = arith.constant 163 : index
      %613 = vector.load %arg7[%c0_220, %c163_221] : memref<2x512xf32, #tpu.memory_space<vmem>>, vector<2x256xf32>
      %614 = vector.broadcast %609 : f32 to vector<2x256xf32>
      %615 = arith.mulf %614, %613 : vector<2x256xf32>
      %616 = arith.addf %596, %612 : vector<2x256xf32>
      %617 = arith.addf %597, %615 : vector<2x256xf32>
      %c48 = arith.constant 48 : index
      %618 = memref.load %arg2[%c48] : memref<98xf32, #tpu.memory_space<smem>>
      %c97_222 = arith.constant 97 : index
      %619 = memref.load %arg2[%c97_222] : memref<98xf32, #tpu.memory_space<smem>>
      %c0_223 = arith.constant 0 : index
      %c179 = arith.constant 179 : index
      %620 = vector.load %arg6[%c0_223, %c179] : memref<2x512xf32, #tpu.memory_space<vmem>>, vector<2x256xf32>
      %621 = vector.broadcast %618 : f32 to vector<2x256xf32>
      %622 = arith.mulf %621, %620 : vector<2x256xf32>
      %c0_224 = arith.constant 0 : index
      %c179_225 = arith.constant 179 : index
      %623 = vector.load %arg7[%c0_224, %c179_225] : memref<2x512xf32, #tpu.memory_space<vmem>>, vector<2x256xf32>
      %624 = vector.broadcast %619 : f32 to vector<2x256xf32>
      %625 = arith.mulf %624, %623 : vector<2x256xf32>
      %626 = arith.addf %606, %622 : vector<2x256xf32>
      %627 = arith.addf %607, %625 : vector<2x256xf32>
      %628 = arith.addf %626, %616 : vector<2x256xf32>
      %629 = arith.addf %627, %617 : vector<2x256xf32>
      %630 = arith.addf %628, %629 : vector<2x256xf32>
      %c3_i32 = arith.constant 3 : i32
      %631 = vector.broadcast %c3_i32 : i32 to vector<1x256xi32>
      %632 = arith.addi %17, %631 : vector<1x256xi32>
      %c0_i32_226 = arith.constant 0 : i32
      %633 = vector.broadcast %c0_i32_226 : i32 to vector<1x256xi32>
      %634 = arith.cmpi sge, %632, %633 : vector<1x256xi32>
      %c16_i32_227 = arith.constant 16 : i32
      %635 = vector.broadcast %c16_i32_227 : i32 to vector<1x256xi32>
      %636 = arith.cmpi slt, %632, %635 : vector<1x256xi32>
      %637 = arith.andi %634, %636 : vector<1x256xi1>
      %cst_228 = arith.constant 0.000000e+00 : f32
      %638 = vector.shape_cast %637 : vector<1x256xi1> to vector<1x256xi1>
      %639 = vector.broadcast %638 : vector<1x256xi1> to vector<2x256xi1>
      %640 = vector.broadcast %cst_228 : f32 to vector<2x256xf32>
      %641 = arith.select %639, %630, %640 : vector<2x256xi1>, vector<2x256xf32>
      %642 = arith.addf %464, %641 : vector<2x256xf32>
      %643 = arith.addf %642, %553 : vector<2x256xf32>
      %644 = arith.negf %643 : vector<2x256xf32>
      %645 = math.exp %644 : vector<2x256xf32>
      %cst_229 = arith.constant 1.000000e+00 : f32
      %646 = vector.broadcast %cst_229 : f32 to vector<2x256xf32>
      %647 = arith.addf %646, %645 : vector<2x256xf32>
      %648 = arith.divf %646, %647 : vector<2x256xf32>
      %c0_230 = arith.constant 0 : index
      %c0_231 = arith.constant 0 : index
      %c0_232 = arith.constant 0 : index
      %649 = vector.load %arg5[%c0_230, %c0_231, %c0_232] : memref<2x1x256xf32, #tpu.memory_space<vmem>>, vector<2x1x256xf32>
      %650 = vector.shape_cast %649 : vector<2x1x256xf32> to vector<2x256xf32>
      %651 = vector.shape_cast %648 : vector<2x256xf32> to vector<2x1x256xf32>
      tpu.vector_store %arg5[%c0_230, %c0_231, %c0_232], %651 {strides = array<i32>} : memref<2x1x256xf32, #tpu.memory_space<vmem>>, vector<2x1x256xf32>,
    } else {
    }
    return
  }
  func.func @transform_0(%arg0: i32, %arg1: i32) -> i32 {
    %c0_i32 = arith.constant 0 : i32
    %c0_i32_0 = arith.constant 0 : i32
    return %c0_i32 : i32
  }
  func.func @transform_1(%arg0: i32, %arg1: i32) -> (i32, i32) {
    %c0_i32 = arith.constant 0 : i32
    %c0_i32_0 = arith.constant 0 : i32
    %c0_i32_1 = arith.constant 0 : i32
    return %c0_i32, %c0_i32_0 : i32, i32
  }
  func.func @transform_2(%arg0: i32, %arg1: i32) -> (i32, i32, i32) {
    %c0_i32 = arith.constant 0 : i32
    %c0_i32_0 = arith.constant 0 : i32
    return %arg0, %arg1, %c0_i32 : i32, i32, i32
  }
  func.func @transform_3(%arg0: i32, %arg1: i32) -> (i32, i32, i32) {
    %c0_i32 = arith.constant 0 : i32
    %c0_i32_0 = arith.constant 0 : i32
    %c0_i32_1 = arith.constant 0 : i32
    return %arg0, %c0_i32, %c0_i32_0 : i32, i32, i32
  }
}

</mosaic_0001>

<bundles_post_ra>
// kernel: tpu_custom_call.1
= control target key start
LH: loop header
LB: loop body
LE: loop exit
PB: predicated region body
PF: predicated region fallthrough
CT: control target
= control target key end

     0   :  { %8 = vsyncpa [#allocation7], 0  ;;  %s2390_s0 = inlined_call_operand.hbm [shape: f32[98], index: 0, kind: input, shape index: {}]   ;;  %s2391_s1 = inlined_call_operand.hbm [shape: s32[1,256], index: 1, kind: input, shape index: {}]   ;;  %s2392_s2 = inlined_call_operand.hbm [shape: f32[2,4,256], index: 2, kind: input, shape index: {}]   ;;  %s2393_s3 = inlined_call_operand.hbm [shape: f32[2,1,256], index: 3, kind: output, shape index: {}]  }
   0x1   :  { %9 = vsyncpa [#allocation5], 0 }
   0x2   :  { %10 = vsyncpa [#allocation10], 0 }
   0x3   :  { %11 = vsyncpa [#allocation6], 0  ;;  %s17_s14 = sshll.u32 %s2390_s0, 4  ;;  %s26_s17 = sshll.u32 %s2391_s1, 4  ;;  %s18_s14 = int_to_ptr.hbm [resolvable:$true] %s17_s14  ;;  %s27_s17 = int_to_ptr.hbm [resolvable:$true] %s26_s17 }
   0x4   :  { %s1692_s18 = smov [#allocation4]   ;;  %s1693_s19 = smov [#allocation8]  }
   0x5   :  { %20 = dma.hbm_to_smem %s18_s14, 16, %s1692_s18, [#allocation7]  }
   0x6   :  { %s28_s20 = sshll.u32 %s1693_s19, 4  ;;  %s36_s23 = sshll.u32 %s2392_s2, 4  ;;  %s29_s20 = int_to_ptr.vmem [resolvable:$true] %s28_s20  ;;  %s37_s23 = int_to_ptr.hbm [resolvable:$true] %s36_s23 }
   0x7   :  { %31 = dma.hbm_to_vmem [thread:$0]  %s27_s17, 32, %s29_s20, [#allocation5]  }
   0x8   :  { %s1694_s24 = smov [#allocation9]   ;;  %s1695_s0 = smov 128  }
   0x9   :  { %s38_s25 = sshll.u32 %s1694_s24, 4  ;;  %s1696_s26 = smov 8   ;;  %s39_s25 = int_to_ptr.vmem [resolvable:$true] %s38_s25 }
   0xa   :  { %44 = dma.hbm_to_vmem [thread:$0]  %s37_s23, 256, %s39_s25, [#allocation10], %s1695_s0, %s1695_s0, %s1696_s26  }
   0xb   :  { %1684 = dma.done.wait [#allocation7], 16  }
   0xc   :  { %1685 = vsyncadd [#allocation7], 4294967280 }
   0xd   :  { %1686 = dma.done.wait [#allocation5], 32  }
   0xe   :  { %1687 = vsyncadd [#allocation5], 4294967264 }
   0xf   :  { %1688 = dma.done.wait [#allocation10], 256  }
  0x10   :  { %1689 = vsyncadd [#allocation10], 4294967040 }
  0x11   :  { %57 = sfence }
  0x12   :  { %v58_v0 = vld [vmem:[#allocation9] sm:$0xff]  ;;  %v59_v1 = vld [vmem:[#allocation9 + $0x8] sm:$0xff]  ;;  %v1697_v2 = vmov 0.0   ;;  %vm73_vm0 = vcmask 1043456   ;;  %vm151_vm1 = vcmask 1041408   ;;  %vm2394_vm2 = vcmask 1041409  }
  0x13   :  { %62 = vst [vmem:[#allocation1] ss:$2 sm:$0xff] %v58_v0  ;;  %vm161_vm3 = vcmask 1043459   ;;  %vm163_vm4 = vcmask 1045509   ;;  %vm165_vm5 = vcmask 1047559   ;;  %s1752_s1 = sld [smem:[#allocation4 + $0x15]] }
  0x14   :  { %66 = vst [vmem:[#allocation1 + $0x10] ss:$2 sm:$0xff] %v59_v1  ;;  %s1476_s2 = sld [smem:[#allocation4 + $0xe]]  ;;  %s1698_s4 = smov 96   ;;  %vm314_vm6 = vcmask 523264   ;;  %vm271_vm7 = vcmask 785408  }
  0x15   :  { %238 = vst [vmem:[#allocation2] sm:$0x3] %v1697_v2  ;;  %s1480_s27 = sld [smem:[#allocation4 + $0x1c]]  ;;  %s1699_s7 = smov 64   ;;  %vm355_vm8 = vcmask 261120   ;;  %vm370_vm9 = vcmask 916480  }
  0x16   :  { %239 = vst [vmem:[#allocation2 + $0x6] sm:$0x3] %v1697_v2  ;;  %s1757_s28 = sld [smem:[#allocation4 + $0x1d]]  ;;  %s1700_s11 = smov 32  }
  0x17   :  { %240 = vst [vmem:[#allocation3] sm:$0x3] %v1697_v2  ;;  %s1759_s29 = sld [smem:[#allocation4 + $0x23]] }
  0x18   :  { %241 = vst [vmem:[#allocation3 + $0x6] sm:$0x3] %v1697_v2  ;;  %s1761_s30 = sld [smem:[#allocation4 + $0x2a]] }
  0x19   :  { %s1479_s5 = sld [smem:[#allocation4 + $0x46]] }
  0x1a   :  { %v63_v3 = vld.sshfl [vmem:[#allocation1] sm:$0xff pattern:$0x75316420]  ;;  %v64_v4 = vld.sshfl [vmem:[#allocation1 + $0x8] sm:$0xff pattern:$0x75316420] }
  0x1b   :  { %v67_v5 = vld.sshfl [vmem:[#allocation1 + $0x10] sm:$0xff pattern:$0x75316420]  ;;  %v68_v6 = vld.sshfl [vmem:[#allocation1 + $0x18] sm:$0xff pattern:$0x75316420] }
  0x1c   :  { %v74_v7 = vsel %vm73_vm0, %v63_v3, 0.0  ;;  %v81_v8 = vsel %vm73_vm0, %v64_v4, 0.0  ;;  %v88_v9 = vsel %vm73_vm0, %v67_v5, 0.0  ;;  %v95_v10 = vsel %vm73_vm0, %v68_v6, 0.0  ;;  %102 = vst [vmem:[#allocation1] ss:$2 sm:$0xff] %v58_v0 }
  0x1d   :  { %v75_v11 = vrot.slane %v74_v7, 4  ;;  %v82_v12 = vrot.slane %v81_v8, 4  ;;  %v89_v13 = vrot.slane %v88_v9, 4  ;;  %v96_v14 = vrot.slane %v95_v10, 4  ;;  %106 = vst [vmem:[#allocation1 + $0x10] ss:$2 sm:$0xff] %v59_v1 }
  0x1e   :  { %s1490_s6 = sld [smem:[#allocation4 + $0xf]] }
  0x1f   :  { %v76_v15 = vadd.f32 %v75_v11, %v74_v7  ;;  %v83_v16 = vadd.f32 %v82_v12, %v81_v8  ;;  %v90_v17 = vadd.f32 %v89_v13, %v88_v9  ;;  %v97_v18 = vadd.f32 %v96_v14, %v95_v10  ;;  %s1492_s8 = sld [smem:[#allocation4 + $0x16]] }
  0x20   :  { %v284_v14 = vstv %s1752_s1  ;;  %s1483_s9 = sld [smem:[#allocation4 + $0x54]] }
  0x21   :  { %v77_v19 = vrot.slane %v76_v15, 2  ;;  %v84_v20 = vrot.slane %v83_v16, 2  ;;  %v91_v21 = vrot.slane %v90_v17, 2  ;;  %v98_v22 = vrot.slane %v97_v18, 2  ;;  %s1496_s10 = sld [smem:[#allocation4 + $0x24]] }
  0x22   :  { %s1498_s12 = sld [smem:[#allocation4 + $0x2b]] }
  0x23   :  { %v78_v23 = vadd.f32 %v77_v19, %v76_v15  ;;  %v85_v24 = vadd.f32 %v84_v20, %v83_v16  ;;  %v92_v25 = vadd.f32 %v91_v21, %v90_v17  ;;  %v99_v26 = vadd.f32 %v98_v22, %v97_v18  ;;  %v103_v27 = vld.sshfl [vmem:[#allocation1] sm:$0xff pattern:$0x75316420]  ;;  %v104_v28 = vld.sshfl [vmem:[#allocation1 + $0x8] sm:$0xff pattern:$0x75316420] }
  0x24   :  { %v107_v29 = vld.sshfl [vmem:[#allocation1 + $0x10] sm:$0xff pattern:$0x75316420]  ;;  %v108_v30 = vld.sshfl [vmem:[#allocation1 + $0x18] sm:$0xff pattern:$0x75316420]  ;;  %v263_v15 = vstv %s1476_s2  ;;  %v305_v19 = vstv %s1480_s27 }
  0x25   :  { %v79_v31 = vrot.slane %v78_v23, 1  ;;  %v86_v32 = vrot.slane %v85_v24, 1  ;;  %v93_v33 = vrot.slane %v92_v25, 1  ;;  %v100_v34 = vrot.slane %v99_v26, 1  ;;  %s1491_s13 = sld [smem:[#allocation4 + $0x40]] }
  0x26   :  { %v113_v35 = vsel %vm73_vm0, %v103_v27, -inf  ;;  %v120_v36 = vsel %vm73_vm0, %v104_v28, -inf  ;;  %v127_v37 = vsel %vm73_vm0, %v107_v29, -inf  ;;  %v134_v38 = vsel %vm73_vm0, %v108_v30, -inf  ;;  %s1477_s14 = sld [smem:[#allocation4 + $0x3f]] }
  0x27   :  { %v80_v39 = vadd.f32 %v79_v31, %v78_v23  ;;  %v87_v40 = vadd.f32 %v86_v32, %v85_v24  ;;  %v94_v41 = vadd.f32 %v93_v33, %v92_v25  ;;  %v101_v42 = vadd.f32 %v100_v34, %v99_v26  ;;  %s1481_s15 = sld [smem:[#allocation4 + $0x4d]] }
  0x28   :  { %v114_v43 = vrot.slane %v113_v35, 4  ;;  %v121_v44 = vrot.slane %v120_v36, 4  ;;  %v128_v45 = vrot.slane %v127_v37, 4  ;;  %v135_v46 = vrot.slane %v134_v38, 4  ;;  %s1497_s16 = sld [smem:[#allocation4 + $0x55]] }
  0x29   :  { %v149_v47 = vrot.slane %v87_v40, 6  ;;  %v150_v48 = vrot.slane %v101_v42, 6  ;;  %v472_v28 = vstv %s1757_s28  ;;  %v327_v29 = vstv %s1759_s29  ;;  %s1485_s17 = sld [smem:[#allocation4 + $0x5b]] }
  0x2a   :  { %v115_v49 = vmax.f32 %v113_v35, %v114_v43  ;;  %v122_v50 = vmax.f32 %v120_v36, %v121_v44  ;;  %v129_v51 = vmax.f32 %v127_v37, %v128_v45  ;;  %v136_v52 = vmax.f32 %v134_v38, %v135_v46  ;;  %s1495_s18 = sld [smem:[#allocation4 + $0x4e]] }
  0x2b   :  { %v152_v53 = vsel %vm151_vm1, %v80_v39, %v149_v47  ;;  %v153_v54 = vsel %vm151_vm1, %v94_v41, %v150_v48  ;;  %v347_v32 = vstv %s1761_s30  ;;  %v286_v36 = vstv %s1479_s5  ;;  %s1505_s19 = sld [smem:[#allocation4 + $0x41]] }
  0x2c   :  { %v158_v55 = vrot.slane %v153_v54, 7  ;;  %v116_v56 = vrot.slane %v115_v49, 2  ;;  %v123_v57 = vrot.slane %v122_v50, 2  ;;  %v130_v58 = vrot.slane %v129_v51, 2  ;;  %s1493_s20 = sld [smem:[#allocation4 + $0x47]] }
  0x2d   :  { %v137_v59 = vrot.slane %v136_v52, 2  ;;  %v431_v38 = vstv %s1490_s6  ;;  %v451_v40 = vstv %s1492_s8  ;;  %v329_v45 = vstv %s1483_s9  ;;  %s1506_s21 = sld [smem:[#allocation4 + $0x17]] }
  0x2e   :  { %v160_v60 = vsel %vm2394_vm2, %v158_v55, %v152_v53  ;;  %v117_v61 = vmax.f32 %v115_v49, %v116_v56  ;;  %v124_v62 = vmax.f32 %v122_v50, %v123_v57  ;;  %v131_v63 = vmax.f32 %v129_v51, %v130_v58  ;;  %s1508_s22 = sld [smem:[#allocation4 + $0x1e]] }
  0x2f   :  { %v162_v0 = vsel %vm161_vm3, %v158_v55, %v160_v60  ;;  %v138_v1 = vmax.f32 %v136_v52, %v137_v59  ;;  %v493_v46 = vstv %s1496_s10  ;;  %v513_v47 = vstv %s1498_s12  ;;  %s1499_s23 = sld [smem:[#allocation4 + $0x5c]] }
  0x30   :  { %v164_v2 = vsel %vm163_vm4, %v158_v55, %v162_v0  ;;  %v118_v3 = vrot.slane %v117_v61, 1  ;;  %v125_v4 = vrot.slane %v124_v62, 1  ;;  %v132_v5 = vrot.slane %v131_v63, 1  ;;  %s1509_s24 = sld [smem:[#allocation4 + $0x4f]] }
  0x31   :  { %v166_v6 = vsel %vm165_vm5, %v158_v55, %v164_v2  ;;  %v139_v7 = vrot.slane %v138_v1, 1  ;;  %v433_v52 = vstv %s1491_s13  ;;  %v265_v53 = vstv %s1477_s14  ;;  %s1511_s25 = sld [smem:[#allocation4 + $0x56]] }
  0x32   :  { %168 = vst [vmem:[#allocation2 + $0x2] sm:$0xf] %v166_v6  ;;  %v126_v8 = vmax.f32 %v124_v62, %v125_v4  ;;  %v133_v9 = vmax.f32 %v131_v63, %v132_v5  ;;  %v119_v11 = vmax.f32 %v117_v61, %v118_v3  ;;  %v308_v54 = vstv %s1481_s15  ;;  %s1504_s0 = sld [smem:[#allocation4 + $0x10]] }
  0x33   :  { %v140_v10 = vmax.f32 %v138_v1, %v139_v7  ;;  %v495_v59 = vstv %s1497_s16  ;;  %v349_v60 = vstv %s1485_s17  ;;  %v475_v61 = vstv %s1495_s18  ;;  %s1520_s26 = sld [smem:[#allocation4 + $0x18]] }
  0x34   :  { %v173_v12 = vrot.slane %v126_v8, 6  ;;  %v597_v2 = vstv %s1505_s19  ;;  %v453_v3 = vstv %s1493_s20  ;;  %v615_v4 = vstv %s1506_s21  ;;  %s1524_s1 = sld [smem:[#allocation4 + $0x26]] }
  0x35   :  { %v174_v13 = vrot.slane %v140_v10, 6  ;;  %v636_v10 = vstv %s1508_s22  ;;  %s1507_s2 = sld [smem:[#allocation4 + $0x48]] }
  0x36   :  { %v175_v17 = vsel %vm151_vm1, %v119_v11, %v173_v12  ;;  %v515_v11 = vstv %s1499_s23  ;;  %v639_v12 = vstv %s1509_s24  ;;  %s1535_s27 = sld [smem:[#allocation4 + $0x4a]] }
  0x37   :  { %v176_v16 = vsel %vm151_vm1, %v133_v9, %v174_v13  ;;  %s1510_s28 = sld [smem:[#allocation4 + $0x25]] }
  0x38   :  { %v179_v18 = vrot.slane %v176_v16, 7  ;;  %s1525_s29 = sld [smem:[#allocation4 + $0x57]] }
  0x39   :  { %v1766_v20 = vld [vmem:[#allocation2] sm:$0x3f]  ;;  %s1548_s30 = sld [smem:[#allocation4 + $0x1a]] }
  0x3a   :  { %v285_v21 = vmul.f32 %v284_v14, %v1766_v20  ;;  %v264_v22 = vmul.f32 %v263_v15, %v1766_v20  ;;  %v304_v23 = vld [vmem:[#allocation2 + $0x2] sm:$0x3f]  ;;  %v180_v24 = vsel %vm2394_vm2, %v179_v18, %v175_v17  ;;  %v659_v17 = vstv %s1511_s25  ;;  %s1521_s5 = sld [smem:[#allocation4 + $0x49]] }
  0x3b   :  { %v306_v25 = vmul.f32 %v305_v19, %v304_v23  ;;  %v181_v26 = vsel %vm161_vm3, %v179_v18, %v180_v24  ;;  %v471_v27 = vld [vmem:[#allocation2 + $0x2] sm:$0x3f]  ;;  %v328_v34 = vmul.f32 %v327_v29, %v304_v23  ;;  %v348_v35 = vmul.f32 %v347_v32, %v304_v23  ;;  %s1538_s6 = sld [smem:[#allocation4 + $0x27]] }
  0x3c   :  { %289 = vrot.lane.b32.xlu1 %v285_v21, %s1698_s4  ;;  %268 = vrot.lane.b32.xlu0 %v264_v22, %s1698_s4  ;;  %v182_v30 = vsel %vm163_vm4, %v179_v18, %v181_v26  ;;  %v473_v33 = vmul.f32 %v472_v28, %v471_v27  ;;  %v1782_v37 = vld [vmem:[#allocation2] sm:$0x3f]  ;;  %v494_v49 = vmul.f32 %v493_v46, %v471_v27  ;;  %v780_v21 = vstv %s1520_s26  ;;  %s1553_s8 = sld [smem:[#allocation4 + $0x59]] }
  0x3d   :  { %311 = vrot.lane.b32.xlu2 %v306_v25, %s1699_s7  ;;  %v183_v31 = vsel %vm165_vm5, %v179_v18, %v182_v30  ;;  %v432_v42 = vmul.f32 %v431_v38, %v1782_v37  ;;  %v452_v43 = vmul.f32 %v451_v40, %v1782_v37  ;;  %v514_v50 = vmul.f32 %v513_v47, %v471_v27  ;;  %v1810_v7 = vld [vmem:[#allocation2] sm:$0x3f]  ;;  %s1534_s9 = sld [smem:[#allocation4 + $0x19]] }
  0x3e   :  { %185 = vst [vmem:[#allocation3 + $0x2] sm:$0xf] %v183_v31  ;;  %v616_v8 = vmul.f32 %v615_v4, %v1810_v7  ;;  %v1815_v9 = vld [vmem:[#allocation2 + $0x2] sm:$0x3f]  ;;  %v595_v18 = vstv %s1504_s0  ;;  %v823_v26 = vstv %s1524_s1  ;;  %v617_v27 = vstv %s1507_s2  ;;  %s1566_s10 = sld [smem:[#allocation4 + $0x29]] }
  0x3f   :  { %v637_v13 = vmul.f32 %v636_v10, %v1815_v9  ;;  %v779_v19 = vld [vmem:[#allocation2 + $0x2] sm:$0xf]  ;;  %v596_v23 = vmul.f32 %v595_v18, %v1810_v7  ;;  %v948_v31 = vstv %s1535_s27  ;;  %v657_v32 = vstv %s1510_s28  ;;  %s1539_s12 = sld [smem:[#allocation4 + $0x58]] }
  0x40   :  { %v781_v24 = vmul.f32 %v780_v21, %v779_v19  ;;  %v1829_v25 = vld [vmem:[#allocation2 + $0x2] sm:$0x3f]  ;;  %s1513_s13 = sld [smem:[#allocation4 + $0x5d]] }
  0x41   :  { %v824_v28 = vmul.f32 %v823_v26, %v1829_v25  ;;  %v1845_v40 = vld [vmem:[#allocation2 + $0x2] sm:$0x3f]  ;;  %v986_v47 = vstv %s1538_s6  ;;  %s1552_s14 = sld [smem:[#allocation4 + $0x28]]  ;;  %s1701_s6 = smov 112  }
  0x42   :  { %v1849_v46 = vld [vmem:[#allocation2 + $0x2] sm:$0x3f]  ;;  %s1549_s15 = sld [smem:[#allocation4 + $0x4b]] }
  0x43   :  { %s243_s16 = sld [smem:[#allocation4]] }
  0x44   :  { %478 = vrot.lane.b32.xlu1 %v473_v33, %s1699_s7  ;;  %332 = vrot.lane.b32.xlu0 %v328_v34, %s1699_s7  ;;  %v658_v34 = vmul.f32 %v657_v32, %v1815_v9  ;;  %s1518_s17 = sld [smem:[#allocation4 + $0x11]] }
  0x45   :  { %352 = vrot.lane.b32.xlu2 %v348_v35, %s1700_s11  ;;  %v1785_v39 = vld [vmem:[#allocation3] sm:$0x3f]  ;;  %s1563_s18 = sld [smem:[#allocation4 + $0x4c]] }
  0x46   :  { %v287_v41 = vmul.f32 %v286_v36, %v1785_v39  ;;  %v307_v44 = vld [vmem:[#allocation3 + $0x2] sm:$0x3f]  ;;  %v266_v56 = vmul.f32 %v265_v53, %v1785_v39  ;;  %v825_v36 = vstv %s1525_s29  ;;  %s1870_s19 = sld [smem:[#allocation4 + $0x50]] }
  0x47   :  { %v330_v48 = vmul.f32 %v329_v45, %v307_v44  ;;  %v1795_v51 = vld [vmem:[#allocation3] sm:$0x3f]  ;;  %v309_v57 = vmul.f32 %v308_v54, %v307_v44  ;;  %v350_v63 = vmul.f32 %v349_v60, %v307_v44  ;;  %s1874_s20 = sld [smem:[#allocation4 + $0x2c]] }
  0x48   :  { %v434_v55 = vmul.f32 %v433_v52, %v1795_v51  ;;  %v474_v58 = vld [vmem:[#allocation3 + $0x2] sm:$0x3f]  ;;  %v454_v6 = vmul.f32 %v453_v3, %v1795_v51  ;;  %v945_v52 = vstv %s1534_s9  ;;  %v1112_v3 = vstv %s1549_s15  ;;  %s1562_s21 = sld [smem:[#allocation4 + $0x1b]] }
  0x49   :  { %v496_v62 = vmul.f32 %v495_v59, %v474_v58  ;;  %v476_v0 = vmul.f32 %v475_v61, %v474_v58  ;;  %v1805_v1 = vld [vmem:[#allocation3] sm:$0x3f]  ;;  %v516_v14 = vmul.f32 %v515_v11, %v474_v58  ;;  %v946_v54 = vmul.f32 %v945_v52, %v1849_v46  ;;  %s1890_s22 = sld [smem:[#allocation4 + $0x7]] }
  0x4a   :  { %v598_v5 = vmul.f32 %v597_v2, %v1805_v1  ;;  %v1819_v15 = vld [vmem:[#allocation3 + $0x2] sm:$0x3f]  ;;  %v618_v29 = vmul.f32 %v617_v27, %v1805_v1  ;;  %v988_v58 = vstv %s1539_s12  ;;  %v759_v10 = vstv %s1518_s17  ;;  %s1486_s23 = sld [smem:[#allocation4 + $0x1]] }
  0x4b   :  { %v640_v16 = vmul.f32 %v639_v12, %v1819_v15  ;;  %v660_v22 = vmul.f32 %v659_v17, %v1819_v15  ;;  %v1836_v30 = vld [vmem:[#allocation3 + $0x2] sm:$0x3f]  ;;  %v1276_v12 = vstv %s1563_s18  ;;  %s1895_s24 = sld [smem:[#allocation4 + $0x43]] }
  0x4c   :  { %296 = vrot.lane.b32.xlu1 %v287_v41, %s1698_s4  ;;  %436 = vrot.lane.b32.xlu0 %v432_v42, %s1698_s4  ;;  %v949_v33 = vmul.f32 %v948_v31, %v1836_v30  ;;  %v1840_v35 = vld [vmem:[#allocation3 + $0x2] sm:$0x3f]  ;;  %v1109_v41 = vstv %s1548_s30  ;;  %v989_v60 = vmul.f32 %v988_v58, %v1836_v30  ;;  %s1899_s25 = sld [smem:[#allocation4 + $0x1f]] }
  0x4d   :  { %456 = vrot.lane.b32.xlu2 %v452_v43, %s1698_s4  ;;  %v826_v38 = vmul.f32 %v825_v36, %v1840_v35  ;;  %v782_v42 = vld [vmem:[#allocation3 + $0x2] sm:$0xf]  ;;  %v783_v43 = vstv %s1521_s5  ;;  %v1110_v44 = vmul.f32 %v1109_v41, %v1845_v40  ;;  %s1903_s0 = sld [smem:[#allocation4 + $0x38]] }
  0x4e   :  { %v784_v45 = vmul.f32 %v783_v43, %v782_v42  ;;  %v1878_v11 = vld [vmem:[#allocation3 + $0x2] sm:$0x3f]  ;;  %v1273_v41 = vstv %s1562_s21  ;;  %s1907_s26 = sld [smem:[#allocation4 + $0x5a]] }
  0x4f   :  { %v1277_v21 = vmul.f32 %v1276_v12, %v1878_v11  ;;  %s1917_s1 = sld [smem:[#allocation4 + $0x5e]] }
  0x50   :  { %v414_v43 = vstv %s1486_s23  ;;  %s1923_s2 = sld [smem:[#allocation4 + $0x8]] }
  0x51   :  { %s1932_s27 = sld [smem:[#allocation4 + $0x42]] }
  0x52   :  { %s1936_s28 = sld [smem:[#allocation4 + $0x32]] }
  0x53   :  { %s1943_s29 = sld [smem:[#allocation4 + $0x31]] }
  0x54   :  { %339 = vrot.lane.b32.xlu1 %v330_v48, %s1699_s7  ;;  %498 = vrot.lane.b32.xlu0 %v494_v49, %s1699_s7  ;;  %v987_v48 = vmul.f32 %v986_v47, %v1849_v46  ;;  %v1854_v49 = vld [vmem:[#allocation3 + $0x2] sm:$0x3f]  ;;  %v926_v47 = vstv %s1895_s24  ;;  %s1949_s30 = sld [smem:[#allocation4 + $0x12]] }
  0x55   :  { %518 = vrot.lane.b32.xlu2 %v514_v50, %s1700_s11  ;;  %v1152_v50 = vstv %s1553_s8  ;;  %v1113_v4 = vmul.f32 %v1112_v3, %v1854_v49  ;;  %s1961_s5 = sld [smem:[#allocation4 + $0x2d]] }
  0x56   :  { %v1153_v53 = vmul.f32 %v1152_v50, %v1854_v49  ;;  %v257_v50 = vstv %s1903_s0  ;;  %s1978_s8 = sld [smem:[#allocation4 + $0x51]] }
  0x57   :  { %s1536_s9 = sld [smem:[#allocation4 + $0x20]] }
  0x58   :  { %s1500_s12 = sld [smem:[#allocation4 + $0x2]] }
  0x59   :  { %s1502_s15 = sld [smem:[#allocation4 + $0x9]] }
  0x5a   :  { %s1541_s17 = sld [smem:[#allocation4 + $0x5f]] }
  0x5b   :  { %s1530_s18 = sld [smem:[#allocation4 + $0xb]] }
  0x5c   :  { %443 = vrot.lane.b32.xlu1 %v434_v55, %s1698_s4  ;;  %276 = vrot.lane.b32.xlu0 %v266_v56, %s1698_s4  ;;  %v1861_v56 = vld [vmem:[#allocation2 + $0x2] sm:$0x3f]  ;;  %s2041_s21 = sld [smem:[#allocation4 + $0x3b]] }
  0x5d   :  { %319 = vrot.lane.b32.xlu2 %v309_v57, %s1699_s7  ;;  %v1314_v57 = vstv %s1566_s10  ;;  %v1274_v42 = vmul.f32 %v1273_v41, %v1861_v56  ;;  %s1501_s10 = sld [smem:[#allocation4 + $0x33]] }
  0x5e   :  { %v1315_v59 = vmul.f32 %v1314_v57, %v1861_v56  ;;  %s2057_s23 = sld [smem:[#allocation4 + $0x21]] }
  0x5f   :  { %s2062_s24 = sld [smem:[#allocation4 + $0x2f]] }
  0x60   :  { %s1546_s0 = sld [smem:[#allocation4 + $0x13]] }
  0x64   :  { %505 = vrot.lane.b32.xlu1 %v496_v62, %s1699_s7  ;;  %360 = vrot.lane.b32.xlu0 %v350_v63, %s1700_s11  ;;  %v679_v62 = vstv %s1513_s13  ;;  %v1150_v63 = vstv %s1552_s14  ;;  %s1516_s13 = sld [smem:[#allocation4 + $0xa]] }
  0x65   :  { %485 = vrot.lane.b32.xlu2 %v476_v0, %s1699_s7  ;;  %v680_v0 = vmul.f32 %v679_v62, %v1819_v15  ;;  %v1151_v2 = vmul.f32 %v1150_v63, %v1845_v40  ;;  %s1503_s14 = sld [smem:[#allocation4 + $0x3a]] }
  0x6c   :  { %607 = vrot.lane.b32.xlu1 %v598_v5, %s1698_s4  ;;  %463 = vrot.lane.b32.xlu0 %v454_v6, %s1698_s4  ;;  %v246_v5 = vstv %s243_s16  ;;  %s1540_s16 = sld [smem:[#allocation4 + $0x2e]] }
  0x6d   :  { %620 = vrot.lane.b32.xlu2 %v616_v8, %s1698_s4  ;;  %v1876_v8 = vld [vmem:[#allocation2] sm:$0x3f] }
  0x6e   :  { %v760_v19 = vmul.f32 %v759_v10, %v1876_v8 }
  0x74   :  { %642 = vrot.lane.b32.xlu1 %v637_v13, %s1699_s7  ;;  %525 = vrot.lane.b32.xlu0 %v516_v14, %s1700_s11 }
  0x75   :  { %649 = vrot.lane.b32.xlu2 %v640_v16, %s1699_s7  ;;  %v247_v16 = vmul.f32 %v246_v5, %v1766_v20 }
  0x7c   :  { %669 = vrot.lane.b32.xlu1 %v660_v22, %s1699_s7  ;;  %600 = vrot.lane.b32.xlu0 %v596_v23, %s1698_s4 }
  0x7d   :  { %786 = vrot.lane.b32.xlu2 %v781_v24, %s1698_s4 }
  0x84   :  { %828 = vrot.lane.b32.xlu1 %v824_v28, %s1699_s7  ;;  %627 = vrot.lane.b32.xlu0 %v618_v29, %s1698_s4  ;;  %v805_v28 = vstv %s1870_s19  ;;  %v677_v29 = vstv %s1874_s20  ;;  %s1489_s19 = sld [smem:[#allocation4 + $0x39]] }
  0x85   :  { %835 = vrot.lane.b32.xlu2 %v826_v38, %s1699_s7  ;;  %v678_v36 = vmul.f32 %v677_v29, %v1815_v9  ;;  %v255_v9 = vstv %s1890_s22  ;;  %s1531_s20 = sld [smem:[#allocation4 + $0x3c]] }
  0x86   :  { %v256_v3 = vmul.f32 %v255_v9, %v1766_v20  ;;  %v845_v20 = vstv %s1917_s1  ;;  %s2045_s22 = sld [smem:[#allocation4 + $0x44]] }
  0x87   :  { %v846_v29 = vmul.f32 %v845_v20, %v1840_v35  ;;  %s1551_s1 = sld [smem:[#allocation4 + $0x52]] }
  0x8c   :  { %958 = vrot.lane.b32.xlu1 %v949_v33, %s1698_s4  ;;  %662 = vrot.lane.b32.xlu0 %v658_v34, %s1699_s7  ;;  %v806_v34 = vmul.f32 %v805_v28, %v1840_v35  ;;  %v417_v35 = vstv %s1936_s28  ;;  %s1564_s28 = sld [smem:[#allocation4 + $0x22]] }
  0x8d   :  { %991 = vrot.lane.b32.xlu2 %v987_v48, %s1699_s7  ;;  %v802_v48 = vstv %s1899_s25  ;;  %s1545_s25 = sld [smem:[#allocation4 + $0x3d]] }
  0x8e   :  { %v803_v62 = vmul.f32 %v802_v48, %v1829_v25 }
  0x94   :  { %1115 = vrot.lane.b32.xlu1 %v1110_v44, %s1698_s4  ;;  %793 = vrot.lane.b32.xlu0 %v784_v45, %s1698_s4  ;;  %v1912_v45 = vld [vmem:[#allocation3] sm:$0x3f] }
  0x95   :  { %1122 = vrot.lane.b32.xlu2 %v1113_v4, %s1698_s4  ;;  %v258_v4 = vmul.f32 %v257_v50, %v1785_v39  ;;  %v1974_v50 = vld [vmem:[#allocation2] sm:$0x3f] }
  0x97   :  { %v312_v55 = vpop.permute.xlu2 %311 }
  0x98   :  { %v313_v6 = vrot.slane %v312_v55, 6 }
  0x9a   :  { %v315_v22 = vsel %vm314_vm6, %v313_v6, %v312_v55 }
  0x9c   :  { %1162 = vrot.lane.b32.xlu1 %v1153_v53, %s1699_s7  ;;  %951 = vrot.lane.b32.xlu0 %v946_v54, %s1698_s4  ;;  %v415_v53 = vmul.f32 %v414_v43, %v1782_v37 }
  0x9d   :  { %1279 = vrot.lane.b32.xlu2 %v1274_v42, %s1698_s4 }
  0x9f   :  { %v353_v61 = vpop.permute.xlu2 %352 }
  0xa0   :  { %v354_v18 = vrot.slane %v353_v61, 6 }
  0xa2   :  { %v356_v26 = vsel %vm355_vm8, %v354_v18, %v353_v61 }
  0xa4   :  { %1319 = vrot.lane.b32.xlu1 %v1315_v59, %s1699_s7  ;;  %998 = vrot.lane.b32.xlu0 %v989_v60, %s1699_s7  ;;  %v927_v60 = vmul.f32 %v926_v47, %v1912_v45  ;;  %v249_v47 = vstv %s1943_s29  ;;  %s1565_s29 = sld [smem:[#allocation4 + $0x53]] }
  0xa7   :  { %v1880_v13 = vpop.permute.xlu2 %456 }
  0xac   :  { %689 = vrot.lane.b32.xlu1 %v680_v0, %s1700_s11  ;;  %1155 = vrot.lane.b32.xlu0 %v1151_v2, %s1699_s7  ;;  %v1316_v2 = vstv %s1907_s26  ;;  %s1555_s26 = sld [smem:[#allocation4 + $0x60]] }
  0xad   :  { %v1317_v6 = vmul.f32 %v1316_v2, %v1878_v11 }
  0xae   :  { %v1883_v14 = vpop.permute.xlu1 %289  ;;  %v269_v15 = vpop.permute.xlu0 %268 }
  0xaf   :  { %v270_v17 = vrot.slane %v269_v15, 2  ;;  %v519_v38 = vpop.permute.xlu2 %518  ;;  %v291_v55 = vrot.slane %v1883_v14, 2  ;;  %1326 = vrot.lane.b32.xlu2 %v1317_v6, %s1699_s7 }
  0xb0   :  { %v520_v59 = vrot.slane %v519_v38, 6 }
  0xb1   :  { %v272_v23 = vsel %vm271_vm7, %v269_v15, %v270_v17  ;;  %v292_v10 = vsel %vm271_vm7, %v1883_v14, %v291_v55 }
  0xb2   :  { %v274_v24 = vadd.f32 %v272_v23, %v247_v16  ;;  %v521_v16 = vsel %vm355_vm8, %v520_v59, %v519_v38  ;;  %v294_v14 = vadd.f32 %v292_v10, %v256_v3  ;;  %v843_v3 = vstv %s1961_s5  ;;  %s1569_s5 = sld [smem:[#allocation4 + $0x61]] }
  0xb3   :  { %v844_v10 = vmul.f32 %v843_v3, %v1829_v25 }
  0xb4   :  { %v317_v27 = vadd.f32 %v315_v22, %v274_v24  ;;  %764 = vrot.lane.b32.xlu1 %v760_v19, %s1698_s4  ;;  %1286 = vrot.lane.b32.xlu0 %v1277_v21, %s1698_s4  ;;  %v423_v24 = vstv %s1923_s2  ;;  %s1560_s2 = sld [smem:[#allocation4 + $0x14]] }
  0xb6   :  { %v1901_v31 = vadd.f32 %v356_v26, %v317_v27  ;;  %v479_v32 = vpop.permute.xlu1 %478  ;;  %v333_v33 = vpop.permute.xlu0 %332  ;;  %v458_v26 = vrot.slane %v1880_v13, 2 }
  0xb7   :  { %v480_v44 = vrot.slane %v479_v32, 6  ;;  %v1926_v61 = vpop.permute.xlu2 %319  ;;  %v334_v12 = vrot.slane %v333_v33, 6 }
  0xb8   :  { %v459_v43 = vsel %vm271_vm7, %v1880_v13, %v458_v26  ;;  %v321_v48 = vrot.slane %v1926_v61, 6 }
  0xb9   :  { %v481_v63 = vsel %vm314_vm6, %v480_v44, %v479_v32  ;;  %v335_v23 = vsel %vm314_vm6, %v334_v12, %v333_v33  ;;  %v424_v33 = vmul.f32 %v423_v24, %v1782_v37  ;;  %v924_v37 = vstv %s1949_s30  ;;  %s1558_s30 = sld [smem:[#allocation4 + $0xd]] }
  0xba   :  { %v337_v38 = vadd.f32 %v335_v23, %v294_v14  ;;  %v581_v23 = vstv %s1501_s10  ;;  %s1559_s10 = sld [smem:[#allocation4 + $0x3e]] }
  0xbb   :  { %v461_v13 = vadd.f32 %v459_v43, %v424_v33 }
  0xbc   :  { %815 = vrot.lane.b32.xlu1 %v806_v34, %s1699_s7  ;;  %682 = vrot.lane.b32.xlu0 %v678_v36, %s1700_s11  ;;  %v1958_v34 = vld [vmem:[#allocation3] sm:$0x3f]  ;;  %v761_v36 = vstv %s1932_s27  ;;  %s1544_s27 = sld [smem:[#allocation4 + $0xc]] }
  0xbd   :  { %v762_v42 = vmul.f32 %v761_v36, %v1958_v34 }
  0xbe   :  { %v297_v52 = vpop.permute.xlu1 %296  ;;  %v437_v54 = vpop.permute.xlu0 %436 }
  0xbf   :  { %v298_v57 = vrot.slane %v297_v52, 2  ;;  %v438_v58 = vrot.slane %v437_v54, 2  ;;  %v486_v28 = vpop.permute.xlu2 %485  ;;  %771 = vrot.lane.b32.xlu2 %v762_v42, %s1698_s4 }
  0xc0   :  { %v487_v9 = vrot.slane %v486_v28, 6 }
  0xc1   :  { %v439_v0 = vsel %vm271_vm7, %v437_v54, %v438_v58  ;;  %v299_v15 = vsel %vm271_vm7, %v297_v52, %v298_v57  ;;  %v418_v52 = vmul.f32 %v417_v35, %v1795_v51  ;;  %v250_v54 = vmul.f32 %v249_v47, %v1785_v39 }
  0xc2   :  { %v441_v5 = vadd.f32 %v439_v0, %v415_v53  ;;  %v301_v18 = vadd.f32 %v299_v15, %v258_v4  ;;  %v488_v2 = vsel %vm314_vm6, %v487_v9, %v486_v28  ;;  %v968_v15 = vstv %s1978_s8  ;;  %s1561_s8 = sld [smem:[#allocation4 + $0x45]] }
  0xc3   :  { %v969_v14 = vmul.f32 %v968_v15, %v1836_v30  ;;  %v578_v9 = vstv %s1500_s12  ;;  %s2170_s12 = sld [smem:[#allocation4 + $0x4]] }
  0xc4   :  { %v483_v17 = vadd.f32 %v481_v63, %v441_v5  ;;  %936 = vrot.lane.b32.xlu1 %v927_v60, %s1698_s4  ;;  %808 = vrot.lane.b32.xlu0 %v803_v62, %s1699_s7  ;;  %v322_v60 = vsel %vm314_vm6, %v321_v48, %v1926_v61  ;;  %v925_v62 = vmul.f32 %v924_v37, %v1974_v50 }
  0xc6   :  { %v1951_v19 = vadd.f32 %v521_v16, %v483_v17  ;;  %v340_v21 = vpop.permute.xlu1 %339  ;;  %v499_v22 = vpop.permute.xlu0 %498 }
  0xc7   :  { %v341_v27 = vrot.slane %v340_v21, 6  ;;  %v500_v44 = vrot.slane %v499_v22, 6  ;;  %v1990_v6 = vpop.permute.xlu2 %620  ;;  %848 = vrot.lane.b32.xlu2 %v844_v10, %s1700_s11 }
  0xc9   :  { %v342_v32 = vsel %vm314_vm6, %v341_v27, %v340_v21  ;;  %v501_v57 = vsel %vm314_vm6, %v500_v44, %v499_v22  ;;  %v966_v21 = vstv %s1536_s9  ;;  %v582_v27 = vmul.f32 %v581_v23, %v1805_v1  ;;  %s1568_s9 = sld [smem:[#allocation4 + $0x30]] }
  0xca   :  { %v1964_v41 = vadd.f32 %v342_v32, %v301_v18  ;;  %v503_v39 = vadd.f32 %v501_v57, %v461_v13  ;;  %v967_v22 = vmul.f32 %v966_v21, %v1849_v46  ;;  %v751_v57 = vstv %s1516_s13  ;;  %s1702_s13 = smov 51  }
  0xcc   :  { %367 = vrot.lane.b32.xlu1 %v337_v38, %s1701_s6  ;;  %855 = vrot.lane.b32.xlu0 %v846_v29, %s1700_s11 }
  0xce   :  { %v444_v53 = vpop.permute.xlu1 %443  ;;  %v277_v55 = vpop.permute.xlu0 %276 }
  0xcf   :  { %v445_v58 = vrot.slane %v444_v53, 2  ;;  %v278_v59 = vrot.slane %v277_v55, 2  ;;  %v650_v24 = vpop.permute.xlu2 %649  ;;  %971 = vrot.lane.b32.xlu2 %v967_v22, %s1699_s7 }
  0xd0   :  { %v651_v26 = vrot.slane %v650_v24, 6 }
  0xd1   :  { %v446_v63 = vsel %vm271_vm7, %v444_v53, %v445_v58  ;;  %v279_v0 = vsel %vm271_vm7, %v277_v55, %v278_v59  ;;  %v579_v53 = vmul.f32 %v578_v9, %v1810_v7  ;;  %v916_v9 = vstv %s1530_s18  ;;  %s1705_s18 = smov 48  }
  0xd2   :  { %v448_v4 = vadd.f32 %v446_v63, %v418_v52  ;;  %v281_v5 = vadd.f32 %v279_v0, %v250_v54  ;;  %v652_v38 = vsel %vm314_vm6, %v651_v26, %v650_v24  ;;  %v752_v63 = vmul.f32 %v751_v57, %v1876_v8 }
  0xd3   :  { %v918_v57 = vstv %s1531_s20  ;;  %s1556_s20 = sld [smem:[#allocation4 + $0x6]] }
  0xd4   :  { %v324_v61 = vadd.f32 %v322_v60, %v281_v5  ;;  %532 = vrot.lane.b32.xlu1 %v503_v39, %s1701_s6  ;;  %v490_v12 = vadd.f32 %v488_v2, %v448_v4  ;;  %929 = vrot.lane.b32.xlu0 %v925_v62, %s1698_s4  ;;  %v589_v2 = vstv %s1503_s14  ;;  %s1703_s14 = smov 50  }
  0xd5   :  { %v590_v10 = vmul.f32 %v589_v2, %v1805_v1  ;;  %v919_v2 = vmul.f32 %v918_v57, %v1912_v45  ;;  %v1132_v57 = vstv %s1551_s1 }
  0xd6   :  { %v1997_v16 = vpop.permute.xlu1 %505  ;;  %v361_v17 = vpop.permute.xlu0 %360 }
  0xd7   :  { %v362_v20 = vrot.slane %v361_v17, 6  ;;  %v787_v37 = vpop.permute.xlu2 %786 }
  0xd8   :  { %v788_v58 = vrot.slane %v787_v37, 6 }
  0xd9   :  { %v363_v18 = vsel %vm355_vm8, %v362_v20, %v361_v17  ;;  %v587_v17 = vstv %s1502_s15  ;;  %v622_v20 = vrot.slane %v1990_v6, 2  ;;  %s2207_s15 = sld [smem:[#allocation4 + $0x5]] }
  0xda   :  { %v2001_v25 = vadd.f32 %v363_v18, %v324_v61  ;;  %v789_v0 = vsel %vm271_vm7, %v788_v58, %v787_v37  ;;  %v588_v24 = vmul.f32 %v587_v17, %v1810_v7 }
  0xdb   :  { %v791_v4 = vadd.f32 %v789_v0, %v752_v63  ;;  %v623_v1 = vsel %vm271_vm7, %v1990_v6, %v622_v20  ;;  %v1008_v6 = vstv %s1541_s17  ;;  %s1704_s17 = smov 49  }
  0xdc   :  { %978 = vrot.lane.b32.xlu0 %v969_v14, %s1699_s7 }
  0xde   :  { %v608_v28 = vpop.permute.xlu1 %607  ;;  %v2007_v29 = vpop.permute.xlu0 %463 }
  0xdf   :  { %v609_v32 = vrot.slane %v608_v28, 2 }
  0xe1   :  { %v610_v36 = vsel %vm271_vm7, %v608_v28, %v609_v32 }
  0xe2   :  { %v612_v33 = vadd.f32 %v610_v36, %v582_v27  ;;  %v1006_v27 = vstv %s1540_s16  ;;  %v625_v36 = vadd.f32 %v623_v1, %v588_v24  ;;  %v1130_v1 = vstv %s2057_s23  ;;  %s2213_s16 = sld [smem:[#allocation4 + $0x36]]  ;;  %s1708_s23 = smov 45  }
  0xe4   :  { %v2011_v42 = vadd.f32 %v652_v38, %v612_v33  ;;  %v1007_v38 = vmul.f32 %v1006_v27, %v1849_v46  ;;  %v2034_v33 = vpop.permute.xlu2 %835 }
  0xe5   :  { %v837_v24 = vrot.slane %v2034_v33, 6 }
  0xe6   :  { %v643_v43 = vpop.permute.xlu1 %642  ;;  %v526_v44 = vpop.permute.xlu0 %525 }
  0xe7   :  { %v527_v35 = vrot.slane %v526_v44, 6  ;;  %v644_v13 = vrot.slane %v643_v43, 6 }
  0xe9   :  { %v528_v47 = vsel %vm355_vm8, %v527_v35, %v526_v44  ;;  %v645_v59 = vsel %vm314_vm6, %v644_v13, %v643_v43  ;;  %v1009_v35 = vmul.f32 %v1008_v6, %v1836_v30  ;;  %v917_v13 = vmul.f32 %v916_v9, %v1974_v50 }
  0xea   :  { %v2014_v48 = vadd.f32 %v528_v47, %v490_v12 }
  0xec   :  { %v992_v47 = vpop.permute.xlu2 %991 }
  0xed   :  { %v993_v46 = vrot.slane %v992_v47, 6 }
  0xee   :  { %v670_v52 = vpop.permute.xlu1 %669  ;;  %v601_v54 = vpop.permute.xlu0 %600 }
  0xef   :  { %v602_v55 = vrot.slane %v601_v54, 2  ;;  %v671_v39 = vrot.slane %v670_v52, 6 }
  0xf1   :  { %v603_v60 = vsel %vm271_vm7, %v601_v54, %v602_v55  ;;  %v672_v14 = vsel %vm314_vm6, %v671_v39, %v670_v52  ;;  %v465_v54 = vrot.slane %v2007_v29, 2 }
  0xf2   :  { %v605_v62 = vadd.f32 %v603_v60, %v579_v53  ;;  %v425_v53 = vstv %s1489_s19  ;;  %v507_v60 = vrot.slane %v1997_v16, 6  ;;  %s2229_s19 = sld [smem:[#allocation4 + $0x37]] }
  0xf3   :  { %v466_v0 = vsel %vm271_vm7, %v2007_v29, %v465_v54  ;;  %v753_v29 = vstv %s2041_s21  ;;  %s1706_s21 = smov 47  }
  0xf4   :  { %v2021_v3 = vadd.f32 %v645_v59, %v605_v62  ;;  %v994_v59 = vsel %vm314_vm6, %v993_v46, %v992_v47  ;;  %v426_v62 = vmul.f32 %v425_v53, %v1795_v51  ;;  %v1172_v46 = vstv %s1555_s26  ;;  %s1710_s26 = smov [#allocation11]  }
  0xf5   :  { %v1173_v53 = vmul.f32 %v1172_v46, %v1854_v49  ;;  %s1456_s1 = sshll.u32 %s1710_s26, 4  ;;  %s1457_s1 = int_to_ptr.vmem [resolvable:$true] %s1456_s1 }
  0xf6   :  { %v829_v5 = vpop.permute.xlu1 %828  ;;  %v628_v61 = vpop.permute.xlu0 %627 }
  0xf7   :  { %v830_v12 = vrot.slane %v829_v5, 6  ;;  %v629_v15 = vrot.slane %v628_v61, 2 }
  0xf9   :  { %v831_v18 = vsel %vm314_vm6, %v830_v12, %v829_v5  ;;  %v630_v21 = vsel %vm271_vm7, %v628_v61, %v629_v15  ;;  %v508_v5 = vsel %vm314_vm6, %v507_v60, %v1997_v16  ;;  %v2065_v15 = vld [vmem:[#allocation3] sm:$0x3f]  ;;  %v754_v16 = vmul.f32 %v753_v29, %v1958_v34 }
  0xfa   :  { %v833_v22 = vadd.f32 %v831_v18, %v791_v4  ;;  %v632_v23 = vadd.f32 %v630_v21, %v590_v10  ;;  %v468_v10 = vadd.f32 %v466_v0, %v426_v62  ;;  %v1294_v62 = vstv %s1564_s28 }
  0xfb   :  { %v1296_v29 = vstv %s1565_s29 }
  0xfc   :  { %862 = vrot.lane.b32.xlu1 %v833_v22, %s1701_s6  ;;  %v674_v26 = vadd.f32 %v672_v14, %v632_v23  ;;  %v510_v21 = vadd.f32 %v508_v5, %v468_v10 }
  0xfe   :  { %703 = vrot.lane.b32.xlu0 %v674_v26, %s1701_s6  ;;  %v663_v28 = vpop.permute.xlu0 %662  ;;  %v959_v37 = vpop.permute.xlu1 %958 }
  0xff   :  { %v664_v32 = vrot.slane %v663_v28, 6  ;;  %v960_v30 = vrot.slane %v959_v37, 6  ;;  %v1123_v26 = vpop.permute.xlu2 %1122 }
 0x101   :  { %v665_v43 = vsel %vm314_vm6, %v664_v32, %v663_v28  ;;  %v961_v4 = vsel %vm271_vm7, %v960_v30, %v959_v37  ;;  %v838_v28 = vsel %vm314_vm6, %v837_v24, %v2034_v33  ;;  %v1082_v32 = vstv %s1545_s25  ;;  %v2094_v30 = vld [vmem:[#allocation2] sm:$0x3f] }
 0x102   :  { %v667_v7 = vadd.f32 %v665_v43, %v625_v36  ;;  %v963_v17 = vadd.f32 %v961_v4, %v919_v2  ;;  %v1124_v36 = vrot.slane %v1123_v26, 6  ;;  %v1131_v43 = vmul.f32 %v1130_v1, %v1845_v40 }
 0x103   :  { %v1088_v33 = vstv %s1546_s0  ;;  %v1295_v4 = vmul.f32 %v1294_v62, %v1861_v56  ;;  %v1254_v1 = vstv %s1561_s8  ;;  %s1458_s0 = sshll.u32 %s2393_s3, 4  ;;  %s1459_s0 = int_to_ptr.hbm [resolvable:$true] %s1458_s0 }
 0x104   :  { %696 = vrot.lane.b32.xlu2 %v667_v7, %s1701_s6  ;;  %1011 = vrot.lane.b32.xlu1 %v1007_v38, %s1700_s11  ;;  %v1170_v38 = vstv %s2062_s24  ;;  %v1125_v9 = vsel %vm271_vm7, %v1124_v36, %v1123_v26  ;;  %v2112_v26 = vld [vmem:[#allocation3] sm:$0x3f] }
 0x106   :  { %v794_v44 = vpop.permute.xlu0 %793  ;;  %v1116_v20 = vpop.permute.xlu1 %1115 }
 0x107   :  { %v795_v61 = vrot.slane %v794_v44, 6  ;;  %v1117_v60 = vrot.slane %v1116_v20, 6 }
 0x109   :  { %v796_v23 = vsel %vm271_vm7, %v795_v61, %v794_v44  ;;  %v1083_v44 = vmul.f32 %v1082_v32, %v2065_v15  ;;  %v1118_v5 = vsel %vm271_vm7, %v1117_v60, %v1116_v20 }
 0x10a   :  { %v798_v27 = vadd.f32 %v796_v23, %v754_v16  ;;  %v1297_v16 = vmul.f32 %v1296_v29, %v1878_v11 }
 0x10b   :  { %v1127_v37 = vadd.f32 %v1125_v9, %v1083_v44 }
 0x10c   :  { %1018 = vrot.lane.b32.xlu2 %v1009_v35, %s1700_s11  ;;  %v840_v7 = vadd.f32 %v838_v28, %v798_v27  ;;  %v1171_v35 = vmul.f32 %v1170_v38, %v1845_v40 }
 0x10e   :  { %v952_v52 = vpop.permute.xlu0 %951  ;;  %v1163_v6 = vpop.permute.xlu1 %1162 }
 0x10f   :  { %v953_v55 = vrot.slane %v952_v52, 6  ;;  %v1164_v47 = vrot.slane %v1163_v6, 6 }
 0x111   :  { %v954_v58 = vsel %vm271_vm7, %v953_v55, %v952_v52  ;;  %v1165_v52 = vsel %vm314_vm6, %v1164_v47, %v1163_v6  ;;  %v1280_v55 = vpop.permute.xlu2 %1279  ;;  %v1246_v6 = vstv %s1559_s10 }
 0x112   :  { %v956_v63 = vadd.f32 %v954_v58, %v917_v13  ;;  %v2087_v13 = vld [vmem:[#allocation2] sm:$0x3f]  ;;  %v1167_v54 = vadd.f32 %v1165_v52, %v1127_v37  ;;  %v1252_v58 = vstv %s1560_s2  ;;  %v1247_v9 = vmul.f32 %v1246_v6, %v2112_v26  ;;  %s1711_s2 = smov 2  }
 0x113   :  { %v1089_v40 = vmul.f32 %v1088_v33, %v2087_v13  ;;  %v1253_v0 = vmul.f32 %v1252_v58, %v2094_v30 }
 0x114   :  { %v996_v39 = vadd.f32 %v994_v59, %v956_v63  ;;  %375 = vrot.lane.b32.xlu2 %v1964_v41, %s1701_s6  ;;  %v1090_v41 = vstv %s2045_s22  ;;  %v1080_v59 = vstv %s1544_s27  ;;  %v1133_v63 = vmul.f32 %v1132_v57, %v1854_v49  ;;  %s1707_s22 = smov 46  }
 0x115   :  { %v1091_v22 = vmul.f32 %v1090_v41, %v2065_v15  ;;  %v1081_v2 = vmul.f32 %v1080_v59, %v2087_v13  ;;  %v1244_v41 = vstv %s1558_s30 }
 0x116   :  { %1025 = vrot.lane.b32.xlu0 %v996_v39, %s1701_s6  ;;  %v999_v51 = vpop.permute.xlu0 %998 }
 0x117   :  { %v1000_v12 = vrot.slane %v999_v51, 6  ;;  %v1120_v61 = vadd.f32 %v1118_v5, %v1081_v2 }
 0x119   :  { %v1001_v14 = vsel %vm314_vm6, %v1000_v12, %v999_v51  ;;  %v1320_v51 = vpop.permute.xlu1 %1319  ;;  %v1327_v49 = vpop.permute.xlu2 %1326 }
 0x11a   :  { %v1003_v18 = vadd.f32 %v1001_v14, %v963_v17  ;;  %v1281_v17 = vrot.slane %v1280_v55, 6  ;;  %v1336_v14 = vstv %s1569_s5  ;;  %v1328_v37 = vrot.slane %v1327_v49, 6 }
 0x11c   :  { %539 = vrot.lane.b32.xlu2 %v510_v21, %s1701_s6  ;;  %1032 = vrot.lane.b32.xlu1 %v1003_v18, %s1701_s6  ;;  %v1245_v18 = vmul.f32 %v1244_v41, %v2094_v30  ;;  %v1337_v21 = vmul.f32 %v1336_v14, %v1878_v11  ;;  %v1282_v23 = vsel %vm271_vm7, %v1281_v17, %v1280_v55 }
 0x11d   :  { %v1255_v11 = vmul.f32 %v1254_v1, %v2112_v26 }
 0x11e   :  { %1100 = vrot.lane.b32.xlu0 %v1091_v22, %s1698_s4  ;;  %v1156_v39 = vpop.permute.xlu0 %1155  ;;  %v1321_v22 = vrot.slane %v1320_v51, 6  ;;  %v1284_v28 = vadd.f32 %v1282_v23, %v1245_v18 }
 0x11f   :  { %v1157_v10 = vrot.slane %v1156_v39, 6 }
 0x120   :  { %v1322_v32 = vsel %vm314_vm6, %v1321_v22, %v1320_v51 }
 0x121   :  { %v1158_v12 = vsel %vm314_vm6, %v1157_v10, %v1156_v39  ;;  %v690_v27 = vpop.permute.xlu1 %689  ;;  %v2117_v36 = vpop.permute.xlu2 %771  ;;  %v1324_v38 = vadd.f32 %v1322_v32, %v1284_v28 }
 0x122   :  { %v1160_v20 = vadd.f32 %v1158_v12, %v1120_v61  ;;  %v691_v2 = vrot.slane %v690_v27, 6 }
 0x124   :  { %869 = vrot.lane.b32.xlu2 %v840_v7, %s1701_s6  ;;  %1135 = vrot.lane.b32.xlu1 %v1131_v43, %s1699_s7  ;;  %v1334_v43 = vstv %s1568_s9  ;;  %v692_v51 = vsel %vm355_vm8, %v691_v2, %v690_v27 }
 0x125   :  { %v1335_v47 = vmul.f32 %v1334_v43, %v1861_v56 }
 0x126   :  { %1175 = vrot.lane.b32.xlu0 %v1171_v35, %s1700_s11  ;;  %v1287_v24 = vpop.permute.xlu0 %1286 }
 0x127   :  { %v1288_v44 = vrot.slane %v1287_v24, 6 }
 0x129   :  { %v2121_v35 = vpop.permute.xlu1 %764  ;;  %v2125_v33 = vpop.permute.xlu2 %848  ;;  %v1289_v46 = vsel %vm271_vm7, %v1288_v44, %v1287_v24 }
 0x12a   :  { %v1291_v52 = vadd.f32 %v1289_v46, %v1247_v9  ;;  %v766_v44 = vrot.slane %v2121_v35, 2 }
 0x12c   :  { %1093 = vrot.lane.b32.xlu2 %v1089_v40, %s1698_s4  ;;  %1182 = vrot.lane.b32.xlu1 %v1173_v53, %s1700_s11  ;;  %v1329_v53 = vsel %vm314_vm6, %v1328_v37, %v1327_v49 }
 0x12d   :  { %v1331_v55 = vadd.f32 %v1329_v53, %v1291_v52 }
 0x12e   :  { %1196 = vrot.lane.b32.xlu0 %v1167_v54, %s1701_s6  ;;  %v683_v7 = vpop.permute.xlu0 %682 }
 0x12f   :  { %v684_v39 = vrot.slane %v683_v7, 6 }
 0x131   :  { %v2132_v54 = vpop.permute.xlu1 %815  ;;  %v2135_v56 = vpop.permute.xlu2 %971  ;;  %v685_v29 = vsel %vm355_vm8, %v684_v39, %v683_v7 }
 0x132   :  { %v687_v18 = vadd.f32 %v685_v29, %v2021_v3 }
 0x134   :  { %1142 = vrot.lane.b32.xlu2 %v1133_v63, %s1699_s7  ;;  %1257 = vrot.lane.b32.xlu1 %v1253_v0, %s1698_s4 }
 0x136   :  { %1299 = vrot.lane.b32.xlu0 %v1295_v4, %s1699_s7  ;;  %v2129_v40 = vpop.permute.xlu0 %808 }
 0x137   :  { %v810_v39 = vrot.slane %v2129_v40, 6 }
 0x139   :  { %v2139_v58 = vpop.permute.xlu1 %936  ;;  %v811_v29 = vsel %vm314_vm6, %v810_v39, %v2129_v40  ;;  %v1074_v39 = vstv %s2213_s16 }
 0x13c   :  { %1189 = vrot.lane.b32.xlu2 %v1160_v20, %s1701_s6  ;;  %1306 = vrot.lane.b32.xlu1 %v1297_v16, %s1699_s7  ;;  %v694_v20 = vadd.f32 %v692_v51, %v2011_v42  ;;  %s2156_s7 = sld [smem:[#allocation4 + $0x3]] }
 0x13e   :  { %1346 = vrot.lane.b32.xlu0 %v1337_v21, %s1700_s11  ;;  %v2137_v57 = vpop.permute.xlu0 %855 }
 0x141   :  { %v368_v62 = vpop.permute.xlu1 %367 }
 0x142   :  { %v369_v4 = vrot.slane %v368_v62, 2  ;;  %v742_v6 = vstv %s2156_s7 }
 0x144   :  { %1264 = vrot.lane.b32.xlu2 %v1255_v11, %s1698_s4  ;;  %1353 = vrot.lane.b32.xlu1 %v1324_v38, %s1701_s6  ;;  %v371_v61 = vsel %vm370_vm9, %v368_v62, %v369_v4  ;;  %s1515_s4 = sld [smem:[#allocation4 + $0x34]]  ;;  %v938_v4 = vrot.slane %v2139_v58, 2 }
 0x145   :  { %v373_v21 = vadd.f32 %v371_v61, %v1901_v31  ;;  %v907_v61 = vstv %s2170_s12 }
 0x146   :  { %v2141_v60 = vpop.permute.xlu0 %929 }
 0x149   :  { %v533_v12 = vpop.permute.xlu1 %532 }
 0x14a   :  { %v534_v23 = vrot.slane %v533_v12, 2  ;;  %v745_v31 = vstv %s1515_s4 }
 0x14b   :  { %v746_v9 = vmul.f32 %v745_v31, %v1958_v34  ;;  %v767_v34 = vsel %vm271_vm7, %v2121_v35, %v766_v44 }
 0x14c   :  { %1339 = vrot.lane.b32.xlu2 %v1335_v47, %s1700_s11  ;;  %v535_v42 = vsel %vm370_vm9, %v533_v12, %v534_v23  ;;  %v817_v47 = vrot.slane %v2132_v54, 6  ;;  %v939_v12 = vsel %vm271_vm7, %v2139_v58, %v938_v4  ;;  %v973_v23 = vrot.slane %v2135_v56, 6 }
 0x14d   :  { %v537_v43 = vadd.f32 %v535_v42, %v1951_v19 }
 0x14e   :  { %v2145_v0 = vpop.permute.xlu0 %978 }
 0x154   :  { %1360 = vrot.lane.b32.xlu2 %v1331_v55, %s1701_s6  ;;  %s2160_s6 = sld [smem:[#allocation4 + $0x35]] }
 0x15a   :  { %v910_v62 = vstv %s2160_s6 }
 0x15b   :  { %v911_v51 = vmul.f32 %v910_v62, %v1912_v45 }
 0x15e   :  { %v697_v59 = vpop.permute.xlu2 %696 }
 0x15f   :  { %v698_v5 = vrot.slane %v697_v59, 2 }
 0x161   :  { %v699_v17 = vsel %vm370_vm9, %v697_v59, %v698_v5  ;;  %v743_v59 = vmul.f32 %v742_v6, %v1876_v8  ;;  %v857_v5 = vrot.slane %v2137_v57, 6  ;;  %v850_v8 = vrot.slane %v2125_v33, 6 }
 0x162   :  { %v701_v1 = vadd.f32 %v699_v17, %v687_v18 }
 0x166   :  { %v2143_v63 = vpop.permute.xlu2 %1018 }
 0x16e   :  { %v376_v10 = vpop.permute.xlu2 %375  ;;  %v863_v46 = vpop.permute.xlu1 %862 }
 0x16f   :  { %v377_v49 = vrot.slane %v376_v10, 2  ;;  %v864_v17 = vrot.slane %v863_v46, 2 }
 0x170   :  { %v704_v41 = vpop.permute.xlu0 %703 }
 0x171   :  { %v378_v14 = vsel %vm370_vm9, %v376_v10, %v377_v49  ;;  %v705_v16 = vrot.slane %v704_v41, 2  ;;  %v769_v10 = vadd.f32 %v767_v34, %v743_v59  ;;  %v865_v42 = vsel %vm370_vm9, %v863_v46, %v864_v17 }
 0x172   :  { %v380_v22 = vadd.f32 %v378_v14, %v2001_v25  ;;  %v773_v25 = vrot.slane %v2117_v36, 2  ;;  %v858_v14 = vsel %vm355_vm8, %v857_v5, %v2137_v57  ;;  %v1071_v34 = vstv %s2207_s15 }
 0x173   :  { %v706_v24 = vsel %vm370_vm9, %v704_v41, %v705_v16  ;;  %v980_v41 = vrot.slane %v2145_v0, 6  ;;  %v813_v40 = vadd.f32 %v811_v29, %v769_v10 }
 0x174   :  { %v381_v27 = vadd.f32 %v380_v22, %v373_v21  ;;  %v708_v28 = vadd.f32 %v706_v24, %v694_v20  ;;  %v774_v52 = vsel %vm271_vm7, %v2117_v36, %v773_v25  ;;  %v818_v36 = vsel %vm314_vm6, %v817_v47, %v2132_v54 }
 0x175   :  { %v776_v2 = vadd.f32 %v774_v52, %v746_v9  ;;  %v931_v54 = vrot.slane %v2141_v60, 2  ;;  %v851_v21 = vsel %vm355_vm8, %v850_v8, %v2125_v33  ;;  %v941_v22 = vadd.f32 %v939_v12, %v911_v51 }
 0x176   :  { %392 = vst [vmem:[#allocation1] ss:$4 sm:$0xff] %v381_v27  ;;  %v709_v32 = vadd.f32 %v708_v28, %v701_v1  ;;  %v540_v11 = vpop.permute.xlu2 %539  ;;  %v1012_v45 = vpop.permute.xlu1 %1011  ;;  %v908_v24 = vmul.f32 %v907_v61, %v1974_v50  ;;  %v1020_v33 = vrot.slane %v2143_v63, 6  ;;  %v1072_v51 = vmul.f32 %v1071_v34, %v2087_v13 }
 0x177   :  { %v541_v38 = vrot.slane %v540_v11, 2  ;;  %v820_v35 = vadd.f32 %v818_v36, %v776_v2  ;;  %v932_v28 = vsel %vm271_vm7, %v2141_v60, %v931_v54  ;;  %v1013_v31 = vrot.slane %v1012_v45, 6 }
 0x178   :  { %v934_v50 = vadd.f32 %v932_v28, %v908_v24  ;;  %v1021_v60 = vsel %vm355_vm8, %v1020_v33, %v2143_v63 }
 0x179   :  { %v542_v3 = vsel %vm370_vm9, %v540_v11, %v541_v38  ;;  %v860_v27 = vadd.f32 %v858_v14, %v820_v35  ;;  %v981_v11 = vsel %vm314_vm6, %v980_v41, %v2145_v0  ;;  %v853_v38 = vadd.f32 %v851_v21, %v813_v40 }
 0x17a   :  { %v544_v7 = vadd.f32 %v542_v3, %v2014_v48  ;;  %v983_v3 = vadd.f32 %v981_v11, %v941_v22  ;;  %v1014_v44 = vsel %vm355_vm8, %v1013_v31, %v1012_v45  ;;  %v1075_v35 = vmul.f32 %v1074_v39, %v2065_v15 }
 0x17c   :  { %v545_v37 = vadd.f32 %v544_v7, %v537_v43  ;;  %v867_v43 = vadd.f32 %v865_v42, %v853_v38  ;;  %v1023_v52 = vadd.f32 %v1021_v60, %v983_v3 }
 0x17d   :  { %v395_v53 = vld.sshfl [vmem:[#allocation1 + $0x10] sm:$0xff pattern:$0x73625140]  ;;  %v394_v55 = vld.sshfl [vmem:[#allocation1 + $0x8] sm:$0xff pattern:$0x73625140] }
 0x17e   :  { %v870_v19 = vpop.permute.xlu2 %869  ;;  %400 = vrot.lane.b32.xlu2 %v395_v53, %s1702_s13  ;;  %398 = vrot.lane.b32.xlu1 %v394_v55, %s1702_s13  ;;  %v393_v48 = vld.sshfl [vmem:[#allocation1] sm:$0xff pattern:$0x73625140] }
 0x17f   :  { %396 = vrot.lane.b32.xlu0 %v393_v48, %s1702_s13  ;;  %556 = vst [vmem:[#allocation1] ss:$4 sm:$0xff] %v545_v37  ;;  %v871_v49 = vrot.slane %v870_v19, 2 }
 0x181   :  { %v872_v57 = vsel %vm370_vm9, %v870_v19, %v871_v49 }
 0x182   :  { %v874_v25 = vadd.f32 %v872_v57, %v860_v27 }
 0x184   :  { %v875_v47 = vadd.f32 %v874_v25, %v867_v43 }
 0x186   :  { %v2194_v16 = vpop.permute.xlu2 %1093  ;;  %v559_v20 = vld.sshfl [vmem:[#allocation1 + $0x10] sm:$0xff pattern:$0x73625140]  ;;  %v558_v18 = vld.sshfl [vmem:[#allocation1 + $0x8] sm:$0xff pattern:$0x73625140] }
 0x187   :  { %564 = vrot.lane.b32.xlu2 %v559_v20, %s1703_s14  ;;  %562 = vrot.lane.b32.xlu1 %v558_v18, %s1703_s14  ;;  %v557_v58 = vld.sshfl [vmem:[#allocation1] sm:$0xff pattern:$0x73625140]  ;;  %v1095_v62 = vrot.slane %v2194_v16, 2 }
 0x188   :  { %560 = vrot.lane.b32.xlu0 %v557_v58, %s1703_s14  ;;  %720 = vst [vmem:[#allocation1] ss:$4 sm:$0xff] %v709_v32  ;;  %v1026_v1 = vpop.permute.xlu0 %1025  ;;  %v974_v32 = vsel %vm314_vm6, %v973_v23, %v2135_v56 }
 0x189   :  { %v1027_v7 = vrot.slane %v1026_v1, 2  ;;  %v976_v37 = vadd.f32 %v974_v32, %v934_v50  ;;  %v1096_v29 = vsel %vm271_vm7, %v2194_v16, %v1095_v62 }
 0x18a   :  { %v1098_v13 = vadd.f32 %v1096_v29, %v1072_v51 }
 0x18b   :  { %v1028_v55 = vsel %vm370_vm9, %v1026_v1, %v1027_v7  ;;  %v1016_v48 = vadd.f32 %v1014_v44, %v976_v37  ;;  %v1238_v7 = vstv %s2229_s19 }
 0x18d   :  { %v1030_v2 = vadd.f32 %v1028_v55, %v1016_v48 }
 0x18e   :  { %v1143_v0 = vpop.permute.xlu2 %1142  ;;  %v1033_v6 = vpop.permute.xlu1 %1032 }
 0x18f   :  { %v1034_v9 = vrot.slane %v1033_v6, 2  ;;  %v723_v46 = vld.sshfl [vmem:[#allocation1 + $0x10] sm:$0xff pattern:$0x73625140]  ;;  %v1144_v54 = vrot.slane %v1143_v0, 6 }
 0x190   :  { %728 = vrot.lane.b32.xlu1 %v723_v46, %s1704_s17  ;;  %v722_v56 = vld.sshfl [vmem:[#allocation1 + $0x8] sm:$0xff pattern:$0x73625140]  ;;  %v721_v53 = vld.sshfl [vmem:[#allocation1] sm:$0xff pattern:$0x73625140]  ;;  %v1101_v63 = vpop.permute.xlu0 %1100 }
 0x191   :  { %v1035_v19 = vsel %vm370_vm9, %v1033_v6, %v1034_v9  ;;  %726 = vrot.lane.b32.xlu0 %v722_v56, %s1704_s17  ;;  %724 = vrot.lane.b32.xlu2 %v721_v53, %s1704_s17  ;;  %885 = vst [vmem:[#allocation1] ss:$4 sm:$0xff] %v875_v47  ;;  %v1102_v36 = vrot.slane %v1101_v63, 2  ;;  %v1145_v16 = vsel %vm314_vm6, %v1144_v54, %v1143_v0  ;;  %v1235_v6 = vstv %s1556_s20 }
 0x192   :  { %v1037_v59 = vadd.f32 %v1035_v19, %v1023_v52  ;;  %v1239_v47 = vmul.f32 %v1238_v7, %v2112_v26  ;;  %v1236_v9 = vmul.f32 %v1235_v6, %v2094_v30 }
 0x193   :  { %v1103_v41 = vsel %vm271_vm7, %v1101_v63, %v1102_v36 }
 0x194   :  { %v1038_v4 = vadd.f32 %v1037_v59, %v1030_v2  ;;  %v1105_v20 = vadd.f32 %v1103_v41, %v1075_v35 }
 0x196   :  { %v1190_v5 = vpop.permute.xlu2 %1189  ;;  %v1136_v10 = vpop.permute.xlu1 %1135  ;;  %v1147_v23 = vadd.f32 %v1145_v16, %v1105_v20 }
 0x197   :  { %v1137_v8 = vrot.slane %v1136_v10, 6  ;;  %v1191_v22 = vrot.slane %v1190_v5, 2 }
 0x198   :  { %v888_v61 = vld.sshfl [vmem:[#allocation1 + $0x10] sm:$0xff pattern:$0x73625140]  ;;  %v887_v49 = vld.sshfl [vmem:[#allocation1 + $0x8] sm:$0xff pattern:$0x73625140]  ;;  %v1176_v12 = vpop.permute.xlu0 %1175 }
 0x199   :  { %893 = vrot.lane.b32.xlu1 %v888_v61, %s1705_s18  ;;  %891 = vrot.lane.b32.xlu0 %v887_v49, %s1705_s18  ;;  %v886_v17 = vld.sshfl [vmem:[#allocation1] sm:$0xff pattern:$0x73625140]  ;;  %v1138_v14 = vsel %vm314_vm6, %v1137_v8, %v1136_v10  ;;  %v1177_v45 = vrot.slane %v1176_v12, 6  ;;  %v1192_v42 = vsel %vm370_vm9, %v1190_v5, %v1191_v22 }
 0x19a   :  { %1049 = vst [vmem:[#allocation1] ss:$4 sm:$0xff] %v1038_v4  ;;  %v1140_v18 = vadd.f32 %v1138_v14, %v1098_v13 }
 0x19b   :  { %v1178_v15 = vsel %vm355_vm8, %v1177_v45, %v1176_v12 }
 0x19c   :  { %v1180_v57 = vadd.f32 %v1178_v15, %v1140_v18 }
 0x19e   :  { %v1265_v40 = vpop.permute.xlu2 %1264  ;;  %v1183_v21 = vpop.permute.xlu1 %1182  ;;  %v1194_v31 = vadd.f32 %v1192_v42, %v1180_v57  ;;  %v242_v57 = vld [vmem:[#allocation8] sm:$0x3] }
 0x19f   :  { %v1184_v58 = vrot.slane %v1183_v21, 6  ;;  %v1266_v0 = vrot.slane %v1265_v40, 2  ;;  %v1367_v42 = vadd.s32 3, %v242_v57  ;;  %vm876_vm5 = vcmp.ge.s32.totalorder %v242_v57, 0 }
 0x1a0   :  { %v1197_v24 = vpop.permute.xlu0 %1196 }
 0x1a1   :  { %v1185_v1 = vsel %vm355_vm8, %v1184_v58, %v1183_v21  ;;  %889 = vrot.lane.b32.xlu1 %v886_v17, %s1705_s18  ;;  %v1052_v27 = vld.sshfl [vmem:[#allocation1 + $0x10] sm:$0xff pattern:$0x73625140]  ;;  %v1051_v28 = vld.sshfl [vmem:[#allocation1 + $0x8] sm:$0xff pattern:$0x73625140]  ;;  %v1267_v46 = vsel %vm271_vm7, %v1265_v40, %v1266_v0 }
 0x1a2   :  { %v1187_v33 = vadd.f32 %v1185_v1, %v1147_v23  ;;  %1057 = vrot.lane.b32.xlu0 %v1052_v27, %s1706_s21  ;;  %1055 = vrot.lane.b32.xlu2 %v1051_v28, %s1706_s21  ;;  %v1198_v11 = vrot.slane %v1197_v24, 2  ;;  %v1050_v60 = vld.sshfl [vmem:[#allocation1] sm:$0xff pattern:$0x73625140]  ;;  %v1269_v63 = vadd.f32 %v1267_v46, %v1239_v47  ;;  %v710_v1 = vadd.s32 4294967295, %v242_v57 }
 0x1a3   :  { %v382_v28 = vadd.s32 4294967293, %v242_v57 }
 0x1a4   :  { %v1199_v38 = vsel %vm370_vm9, %v1197_v24, %v1198_v11  ;;  %vm711_vm10 = vcmp.ge.s32.totalorder %v710_v1, 0  ;;  %vm712_vm11 = vcmp.lt.s32.totalorder %v710_v1, 16  ;;  %v1039_v11 = vadd.s32 1, %v242_v57 }
 0x1a5   :  { %v1201_v25 = vadd.f32 %v1199_v38, %v1187_v33  ;;  %v546_v33 = vadd.s32 4294967294, %v242_v57  ;;  %vm383_vm12 = vcmp.ge.s32.totalorder %v382_v28, 0  ;;  %vm384_vm13 = vcmp.lt.s32.totalorder %v382_v28, 16  ;;  %vm713_vm0 = vmand %vm711_vm10, %vm712_vm11 }
 0x1a6   :  { %v1258_v50 = vpop.permute.xlu1 %1257  ;;  %v1340_v32 = vpop.permute.xlu2 %1339  ;;  %vm1040_vm1 = vcmp.ge.s32.totalorder %v1039_v11, 0  ;;  %vm1041_vm3 = vcmp.lt.s32.totalorder %v1039_v11, 16  ;;  %vm385_vm4 = vmand %vm383_vm12, %vm384_vm13  ;;  %vm730_vm13 = vcmask 400384  }
 0x1a7   :  { %v1202_v3 = vadd.f32 %v1201_v25, %v1194_v31  ;;  %v1259_v44 = vrot.slane %v1258_v50, 2  ;;  %v1341_v34 = vrot.slane %v1340_v32, 6  ;;  %vm547_vm14 = vcmp.ge.s32.totalorder %v546_v33, 0  ;;  %vm1042_vm10 = vmand %vm1040_vm1, %vm1041_vm3 }
 0x1a8   :  { %v1300_v43 = vpop.permute.xlu0 %1299  ;;  %vm548_vm15 = vcmp.lt.s32.totalorder %v546_v33, 16 }
 0x1a9   :  { %1213 = vst [vmem:[#allocation1] ss:$4 sm:$0xff] %v1202_v3  ;;  %v1260_v37 = vsel %vm271_vm7, %v1258_v50, %v1259_v44  ;;  %v1301_v52 = vrot.slane %v1300_v43, 6  ;;  %v1342_v5 = vsel %vm355_vm8, %v1341_v34, %v1340_v32  ;;  %vm2265_vm7 = vmand %vm547_vm14, %vm548_vm15  ;;  %v1709_v50 = vmov 0  }
 0x1aa   :  { %1053 = vrot.lane.b32.xlu2 %v1050_v60, %s1706_s21  ;;  %v1262_v55 = vadd.f32 %v1260_v37, %v1236_v9  ;;  %v2269_v3 = vsel %vm713_vm0, 1, %v1709_v50  ;;  %v1203_v60 = vadd.s32 2, %v242_v57  ;;  %v2277_v6 = vsel %vm2265_vm7, 1, %v1709_v50 }
 0x1ab   :  { %v1302_v62 = vsel %vm314_vm6, %v1301_v52, %v1300_v43  ;;  %v2271_v43 = vsel %vm385_vm4, 1, %v1709_v50  ;;  %v715_v7 = vperm.slane %v2269_v3, 0  ;;  %v2279_v44 = vsel %vm1042_vm10, 1, %v1709_v50 }
 0x1ac   :  { %v1304_v4 = vadd.f32 %v1302_v62, %v1262_v55  ;;  %vm1204_vm2 = vcmp.ge.s32.totalorder %v1203_v60, 0  ;;  %vm1205_vm14 = vcmp.lt.s32.totalorder %v1203_v60, 16  ;;  %v387_v0 = vperm.slane %v2271_v43, 0 }
 0x1ad   :  { %vm402_vm15 = vcmask 416768   ;;  %vm2285_vm0 = vcmp.eq.s32.totalorder %v715_v7, 1  ;;  %vm1206_vm1 = vmand %vm1204_vm2, %vm1205_vm14  ;;  %vm566_vm4 = vcmask 408576   ;;  %vm1059_vm2 = vcmask 384000  }
 0x1ae   :  { %v1307_v56 = vpop.permute.xlu1 %1306  ;;  %v1361_v30 = vpop.permute.xlu2 %1360  ;;  %v1344_v35 = vadd.f32 %v1342_v5, %v1304_v4  ;;  %vm2293_vm3 = vcmp.eq.s32.totalorder %v387_v0, 1  ;;  %vm1387_vm7 = vcmask 367616   ;;  %v1045_v33 = vperm.slane %v2279_v44, 1 }
 0x1af   :  { %v1308_v53 = vrot.slane %v1307_v56, 6  ;;  %v1362_v10 = vrot.slane %v1361_v30, 2 }
 0x1b0   :  { %v1347_v19 = vpop.permute.xlu0 %1346  ;;  %v1216_v48 = vld.sshfl [vmem:[#allocation1 + $0x10] sm:$0xff pattern:$0x73625140]  ;;  %v1215_v59 = vld.sshfl [vmem:[#allocation1 + $0x8] sm:$0xff pattern:$0x73625140] }
 0x1b1   :  { %v1309_v2 = vsel %vm314_vm6, %v1308_v53, %v1307_v56  ;;  %v1348_v26 = vrot.slane %v1347_v19, 6  ;;  %1221 = vrot.lane.b32.xlu1 %v1216_v48, %s1707_s22  ;;  %1219 = vrot.lane.b32.xlu0 %v1215_v59, %s1707_s22  ;;  %v1214_v61 = vld.sshfl [vmem:[#allocation1] sm:$0xff pattern:$0x73625140]  ;;  %v1363_v49 = vsel %vm370_vm9, %v1361_v30, %v1362_v10  ;;  %vm877_vm6 = vcmp.lt.s32.totalorder %v242_v57, 16 }
 0x1b2   :  { %v1311_v39 = vadd.f32 %v1309_v2, %v1269_v63  ;;  %vm878_vm11 = vmand %vm876_vm5, %vm877_vm6  ;;  %v551_v53 = vperm.slane %v2277_v6, 0  ;;  %v1044_v63 = vperm.slane %v2279_v44, 0  ;;  %vm895_vm5 = vcmask 392192  }
 0x1b3   :  { %v1349_v36 = vsel %vm355_vm8, %v1348_v26, %v1347_v19  ;;  %vm1368_vm8 = vcmp.ge.s32.totalorder %v1367_v42, 0  ;;  %v879_v9 = vsel %vm878_vm11, 1, %v1709_v50  ;;  %v1207_v2 = vsel %vm1206_vm1, 1, %v1709_v50 }
 0x1b4   :  { %v1351_v51 = vadd.f32 %v1349_v36, %v1311_v39  ;;  %v880_v56 = vperm.slane %v879_v9, 0  ;;  %v1208_v39 = vperm.slane %v1207_v2, 0  ;;  %v881_v57 = vperm.slane %v879_v9, 1 }
 0x1b6   :  { %v1354_v8 = vpop.permute.xlu1 %1353  ;;  %v1365_v54 = vadd.f32 %v1363_v49, %v1351_v51  ;;  %vm2302_vm6 = vcmp.eq.s32.totalorder %v880_v56, 1  ;;  %vm1210_vm11 = vcmp.eq.s32.totalorder %v1208_v39, 1  ;;  %vm2350_vm1 = vcmp.eq.s32.totalorder %v881_v57, 1 }
 0x1b7   :  { %v1355_v29 = vrot.slane %v1354_v8, 2 }
 0x1b9   :  { %v1356_v12 = vsel %vm370_vm9, %v1354_v8, %v1355_v29  ;;  %1217 = vrot.lane.b32.xlu1 %v1214_v61, %s1707_s22  ;;  %vm1369_vm9 = vcmp.lt.s32.totalorder %v1367_v42, 16  ;;  %v552_v42 = vperm.slane %v2277_v6, 1 }
 0x1ba   :  { %v1358_v41 = vadd.f32 %v1356_v12, %v1344_v35  ;;  %vm1370_vm12 = vmand %vm1368_vm8, %vm1369_vm9  ;;  %vm2310_vm8 = vcmp.eq.s32.totalorder %v551_v53, 1  ;;  %vm1046_vm9 = vcmp.eq.s32.totalorder %v1044_v63, 1 }
 0x1bb   :  { %v2283_v46 = vsel %vm1370_vm12, 1, %v1709_v50  ;;  %vm1223_vm12 = vcmask 375808   ;;  %v1209_v50 = vperm.slane %v1207_v2, 1 }
 0x1bc   :  { %v1366_v17 = vadd.f32 %v1365_v54, %v1358_v41  ;;  %v1372_v34 = vperm.slane %v2283_v46, 0  ;;  %v1373_v0 = vperm.slane %v2283_v46, 1 }
 0x1be   :  { %1377 = vst [vmem:[#allocation1] ss:$4 sm:$0xff] %v1366_v17  ;;  %vm2319_vm10 = vcmp.eq.s32.totalorder %v1372_v34, 1 }
 0x1c5   :  { %v1380_v14 = vld.sshfl [vmem:[#allocation1 + $0x10] sm:$0xff pattern:$0x73625140]  ;;  %v1379_v45 = vld.sshfl [vmem:[#allocation1 + $0x8] sm:$0xff pattern:$0x73625140] }
 0x1c6   :  { %1385 = vrot.lane.b32.xlu0 %v1380_v14, %s1708_s23  ;;  %1383 = vrot.lane.b32.xlu2 %v1379_v45, %s1708_s23  ;;  %v1378_v13 = vld.sshfl [vmem:[#allocation1] sm:$0xff pattern:$0x73625140] }
 0x1ce   :  { %1381 = vrot.lane.b32.xlu2 %v1378_v13, %s1708_s23 }
 0x1d8   :  { %v2245_v20 = vpop.permute.xlu2 %400 }
 0x1e1   :  { %v2249_v15 = vpop.permute.xlu2 %564 }
 0x1eb   :  { %v725_v58 = vpop.permute.xlu2 %724 }
 0x1f0   :  { %v2247_v16 = vpop.permute.xlu1 %398 }
 0x1f1   :  { %v397_v18 = vpop.permute.xlu0 %396 }
 0x1f2   :  { %v403_v59 = vsel %vm402_vm15, %v397_v18, %v2247_v16  ;;  %v716_v18 = vperm.slane %v2269_v3, 1 }
 0x1f3   :  { %v407_v36 = vsel %vm2293_vm3, %v403_v59, 0.0  ;;  %vm2357_vm3 = vcmp.eq.s32.totalorder %v1045_v33, 1 }
 0x1f4   :  { %vm2336_vm14 = vcmp.eq.s32.totalorder %v716_v18, 1 }
 0x1f9   :  { %v2251_v40 = vpop.permute.xlu1 %562 }
 0x1fa   :  { %v2253_v21 = vpop.permute.xlu0 %560 }
 0x1fb   :  { %v567_v5 = vsel %vm566_vm4, %v2253_v21, %v2251_v40 }
 0x1fc   :  { %v2257_v23 = vpop.permute.xlu2 %1055  ;;  %v571_v49 = vsel %vm2310_vm8, %v567_v5, 0.0 }
 0x202   :  { %v2255_v22 = vpop.permute.xlu1 %728 }
 0x203   :  { %v2259_v24 = vpop.permute.xlu0 %726 }
 0x204   :  { %v1054_v38 = vpop.permute.xlu2 %1053  ;;  %v731_v52 = vsel %vm730_vm13, %v725_v58, %v2259_v24  ;;  %v388_v58 = vperm.slane %v2271_v43, 1  ;;  %v732_v25 = vsel %vm730_vm13, %v2259_v24, %v2255_v22  ;;  %vm554_vm13 = vcmp.eq.s32.totalorder %v552_v42, 1 }
 0x205   :  { %v735_v62 = vsel %vm2285_vm0, %v731_v52, 0.0  ;;  %v1060_v51 = vsel %vm1059_vm2, %v1054_v38, %v2257_v23 }
 0x206   :  { %v737_v10 = vadd.f32 %v735_v62, %v407_v36  ;;  %v1064_v12 = vsel %vm1046_vm9, %v1060_v51, 0.0  ;;  %vm2343_vm0 = vcmp.eq.s32.totalorder %v388_v58, 1 }
 0x208   :  { %v1066_v14 = vadd.f32 %v1064_v12, %v737_v10  ;;  %v1446_v12 = vlaneseq }
 0x20b   :  { %v2261_v27 = vpop.permute.xlu1 %893  ;;  %v2263_v31 = vpop.permute.xlu0 %891 }
 0x20c   :  { %v897_v7 = vsel %vm895_vm5, %v2263_v31, %v2261_v27 }
 0x213   :  { %v890_v32 = vpop.permute.xlu1 %889 }
 0x214   :  { %v1058_v55 = vpop.permute.xlu0 %1057  ;;  %v896_v30 = vsel %vm895_vm5, %v890_v32, %v2263_v31  ;;  %v404_v32 = vsel %vm402_vm15, %v2247_v16, %v2245_v20  ;;  %v736_v20 = vsel %vm2336_vm14, %v732_v25, 0.0  ;;  %v568_v16 = vsel %vm566_vm4, %v2251_v40, %v2249_v15 }
 0x215   :  { %v900_v35 = vsel %vm2302_vm6, %v896_v30, 0.0  ;;  %v1061_v24 = vsel %vm1059_vm2, %v2257_v23, %v1058_v55  ;;  %vm1211_vm15 = vcmp.eq.s32.totalorder %v1209_v50, 1  ;;  %v408_v31 = vsel %vm2343_vm0, %v404_v32, 0.0 }
 0x216   :  { %v902_v45 = vadd.f32 %v900_v35, %v571_v49  ;;  %v901_v23 = vsel %vm2350_vm1, %v897_v7, 0.0  ;;  %v1065_v6 = vsel %vm2357_vm3, %v1061_v24, 0.0  ;;  %v738_v44 = vadd.f32 %v736_v20, %v408_v31 }
 0x217   :  { %vm1375_vm2 = vcmp.eq.s32.totalorder %v1373_v0, 1  ;;  %v572_v9 = vsel %vm554_vm13, %v568_v16, 0.0  ;;  %vm1448_vm14 = vcmp.lt.s32.totalorder %v1446_v12, 256  ;;  %vm2417_vm0 = vcmask 1041409  }
 0x218   :  { %v903_v52 = vadd.f32 %v901_v23, %v572_v9  ;;  %v1067_v56 = vadd.f32 %v1065_v6, %v738_v44 }
 0x220   :  { %v2281_v47 = vpop.permute.xlu2 %1383 }
 0x223   :  { %v1222_v19 = vpop.permute.xlu1 %1221  ;;  %v1220_v54 = vpop.permute.xlu0 %1219 }
 0x224   :  { %v1225_v27 = vsel %vm1223_vm12, %v1220_v54, %v1222_v19 }
 0x225   :  { %v1229_v46 = vsel %vm1211_vm15, %v1225_v27, 0.0 }
 0x226   :  { %v1231_v63 = vadd.f32 %v1229_v46, %v903_v52 }
 0x228   :  { %v1382_v29 = vpop.permute.xlu2 %1381 }
 0x229   :  { %v1388_v61 = vsel %vm1387_vm7, %v1382_v29, %v2281_v47 }
 0x22a   :  { %v1392_v41 = vsel %vm2319_vm10, %v1388_v61, 0.0 }
 0x22b   :  { %v1218_v17 = vpop.permute.xlu1 %1217  ;;  %v1394_v1 = vadd.f32 %v1392_v41, %v1066_v14 }
 0x22c   :  { %v1224_v13 = vsel %vm1223_vm12, %v1218_v17, %v1220_v54 }
 0x22d   :  { %v1228_v21 = vsel %vm1210_vm11, %v1224_v13, 0.0  ;;  %vm1439_vm11 = vcmask 1040384  }
 0x22e   :  { %v1230_v28 = vadd.f32 %v1228_v21, %v902_v45 }
 0x230   :  { %v1396_v11 = vadd.f32 %v1394_v1, %v1230_v28 }
 0x232   :  { %v1570_v43 = vmul.f32 -1.442695, %v1396_v11 }
 0x234   :  { %1592 = vpow2.f32 %v1570_v43 }
 0x238   :  { %v1386_v37 = vpop.permute.xlu0 %1385 }
 0x239   :  { %v1389_v15 = vsel %vm1387_vm7, %v2281_v47, %v1386_v37 }
 0x23a   :  { %v1593_v40 = vpop.eup %1592  ;;  %v1393_v53 = vsel %vm1375_vm2, %v1389_v15, 0.0 }
 0x23b   :  { %v1395_v55 = vadd.f32 %v1393_v53, %v1067_v56  ;;  %v1404_v19 = vadd.f32 1.0, %v1593_v40 }
 0x23d   :  { %v1397_v48 = vadd.f32 %v1395_v55, %v1231_v63  ;;  %1594 = vrcp.f32 %v1404_v19  ;;  %vm1411_vm6 = vweird.f32 %v1404_v19  ;;  %v1417_v29 = vand.u32 2147483648, %v1404_v19 }
 0x23e   :  { %v1415_v61 = vand.u32 2147483647, %v1404_v19 }
 0x23f   :  { %v1571_v59 = vmul.f32 -1.442695, %v1397_v48  ;;  %v1418_v14 = vor.u32 1.1754944e-38, %v1417_v29 }
 0x240   :  { %vm1416_vm12 = vcmp.eq.f32.partialorder %v1415_v61, 8.507059e+37 }
 0x241   :  { %1596 = vpow2.f32 %v1571_v59 }
 0x243   :  { %v1595_v34 = vpop.eup %1594 }
 0x244   :  { %v1407_v26 = vmul.f32 %v1595_v34, %v1404_v19  ;;  %vm1412_vm4 = vweird.f32 %v1595_v34 }
 0x245   :  { %vm2378_vm7 = vmor %vm1411_vm6, %vm1412_vm4 }
 0x246   :  { %v1408_v30 = vsub.f32 1.0, %v1407_v26 }
 0x247   :  { %v1597_v62 = vpop.eup %1596 }
 0x248   :  { %v1405_v2 = vadd.f32 1.0, %v1597_v62  ;;  %v1409_v4 = vmul.f32 %v1595_v34, %v1408_v30 }
 0x24a   :  { %1598 = vrcp.f32 %v1405_v2  ;;  %v1432_v47 = vand.u32 2147483648, %v1405_v2  ;;  %v1410_v10 = vadd.f32 %v1595_v34, %v1409_v4  ;;  %v1430_v8 = vand.u32 2147483647, %v1405_v2 }
 0x24b   :  { %vm1426_vm8 = vweird.f32 %v1405_v2 }
 0x24c   :  { %v1433_v54 = vor.u32 1.1754944e-38, %v1432_v47  ;;  %v1414_v41 = vsel %vm2378_vm7, %v1595_v34, %v1410_v10  ;;  %vm1431_vm10 = vcmp.eq.f32.partialorder %v1430_v8, 8.507059e+37 }
 0x24d   :  { %v1419_v18 = vsel %vm1416_vm12, %v1418_v14, %v1414_v41 }
 0x250   :  { %v1599_v39 = vpop.eup %1598 }
 0x251   :  { %v1422_v36 = vmul.f32 %v1599_v39, %v1405_v2  ;;  %vm1427_vm5 = vweird.f32 %v1599_v39 }
 0x252   :  { %vm1428_vm9 = vmor %vm1426_vm8, %vm1427_vm5 }
 0x253   :  { %v1423_v5 = vsub.f32 1.0, %v1422_v36 }
 0x255   :  { %v1424_v51 = vmul.f32 %v1599_v39, %v1423_v5 }
 0x257   :  { %v1425_v49 = vadd.f32 %v1599_v39, %v1424_v51 }
 0x259   :  { %v1429_v17 = vsel %vm1428_vm9, %v1599_v39, %v1425_v49 }
 0x25a   :  { %v1434_v45 = vsel %vm1431_vm10, %v1433_v54, %v1429_v17 }
 0x25b   :  { %v1438_v13 = vrot.slane %v1434_v45, 7 }
 0x25d   :  { %v1440_v21 = vsel %vm1439_vm11, %v1419_v18, %v1438_v13  ;;  %v1442_v58 = vsel %vm2417_vm0, %v1419_v18, %v1438_v13 }
 0x25e   :  { %v1443_v57 = vrot.slane %v1442_v58, 1  ;;  %1450 = vst.msk [vmem:[#allocation11] sm:$0x3] %vm1448_vm14, %v1440_v21 }
 0x260   :  { %1451 = vst.msk [vmem:[#allocation11 + $0x2] sm:$0x3] %vm1448_vm14, %v1443_v57 }
 0x261   :  { %1464 = dma.vmem_to_hbm [thread:$0]  %s1457_s1, 64, %s1459_s0, [#allocation6], %s1700_s11, %s1700_s11, %s1711_s2  }
 0x262   :  { %1690 = dma.done.wait [#allocation6], 64  }
 0x263   :  { %1691 = vsyncadd [#allocation6], 4294967232 }
 0x264   :  { %1469 = vsyncpa [#allocation5], 1 }
 0x265   :  { %1470 = vsyncpa [#allocation10], 1 }
 0x266   :  { %1471 = vsyncpa [#allocation6], 1 }
 0x267   :  { %1472 = vsyncpa [#allocation7], 1 }

</bundles_post_ra>
